<compile_context>
chip_gen: v5e
topology: v5e:2x2
jax: 0.10.0
libtpu: 0.0.40
codegen_flags: <defaults>
</compile_context>

<pallas_src>
import math
import numpy as np
import jax
import jax.numpy as jnp
from jax import lax
from jax.experimental import pallas as pl
from jax.experimental.pallas import tpu as pltpu

# ---------------- configuration (consistent with MyViT ctor) ----------------
CHW = (4, 16, 16)          # (channels, height, width)
N_PATCHES = 4
N_BLOCKS = 2
HIDDEN_D = 32
N_HEADS = 2
OUT_D = 10
MLP_RATIO = 4

C, H, W = CHW
PS = H // N_PATCHES                      # patch side (4)
INPUT_D = C * PS * PS                    # flattened patch dim (64)
P2 = N_PATCHES ** 2                      # patches per image (16)
S = P2 + 1                               # logical sequence length incl. CLS (17)
D_HEAD = HIDDEN_D // N_HEADS             # 16
MLP_D = MLP_RATIO * HIDDEN_D             # 128
LN_EPS = 1e-5                            # PyTorch nn.LayerNorm default

# Padded, power-of-two per-image sequence layout:
#   row 0            : CLS token
#   rows 1..15       : padding (masked out of attention keys)
#   rows 16..31      : the 16 patch tokens
S_PAD = 32
PATCH_ROW0 = 16
MAX_BLOCK_B = 4                          # MAX_BLOCK_B * S_PAD == 128 (one lane-tile of keys)

QKV_D = (2 + N_HEADS) * HIDDEN_D         # Q(32) | K(32) | per-head placed V (2*32) = 128
WIDE_LANES = QKV_D                       # 128 (== MLP_D)
OUT_LANES = 128                          # lane-dense output slab width
assert MLP_D == WIDE_LANES and QKV_D == WIDE_LANES

# wide slab (per transformer block) row offsets: qkvw | qkvb | w1 | b1, 8-aligned
QKVW_R0, QKVB_R, W1_R0, B1_R, WIDE_ROWS = 0, 32, 40, 72, 80
# narrow (32-lane) slab row offsets: we | base | w2[blk] | b2[blk]
WE_R0 = 0
BASE_R0 = WE_R0 + INPUT_D                # 64
W2_R0 = BASE_R0 + S_PAD                  # 96
B2_R0 = W2_R0 + N_BLOCKS * MLP_D         # 352
NARROW_ROWS = B2_R0 + N_BLOCKS * 8       # 368
# head slab: hw (placed in lanes 0..OUT_D-1) | hb row (dead lanes = -1e30)
HW_R0, HB_R, HEAD_ROWS = 0, 32, 40


# ---------------- in-kernel helpers ----------------
def _layernorm_core(x):
    # Affine (gamma, beta) is folded host-side into the following matmul.
    mu = jnp.mean(x, axis=-1, keepdims=True)
    var = jnp.mean((x - mu) ** 2, axis=-1, keepdims=True)
    return (x - mu) * lax.rsqrt(var + LN_EPS)


def _softmax(x, approx=True):
    m = jnp.max(x, axis=-1, keepdims=True)
    e = jnp.exp(x - m)
    s = jnp.sum(e, axis=-1, keepdims=True)
    if approx:
        return e * pl.reciprocal(s, approx=True)
    return e / s


def _gelu_exact(x):
    # PyTorch nn.GELU() default = exact erf formulation.
    return 0.5 * x * (1.0 + lax.erf(x * (1.0 / math.sqrt(2.0))))


# ---------------- the fused ViT kernel (block_b images per grid step) ----------------
def _make_kernel(block_b):
    def vit_kernel(patches_ref, wide_ref, narrow_ref, bias_ref, head_ref, out_ref, qkv_sc):
        # ---- patch embedding: (block_b*P2, INPUT_D) @ (INPUT_D, D) ----
        emb = jnp.dot(patches_ref[...], narrow_ref[WE_R0:WE_R0 + INPUT_D, :],
                      preferred_element_type=jnp.float32)

        header = narrow_ref[BASE_R0:BASE_R0 + PATCH_ROW0, :]          # (16, D) CLS+pos0, pad rows
        body_base = narrow_ref[BASE_R0 + PATCH_ROW0:BASE_R0 + S_PAD, :]  # (16, D) pos + lin bias

        # Assemble the padded token matrix (block_b*S_PAD, D) with 16-row aligned concatenation.
        pieces = []
        for b in range(block_b):
            pieces.append(header)
            pieces.append(body_base + emb[b * P2:(b + 1) * P2, :])
        x = jnp.concatenate(pieces, axis=0)                            # (BS, HIDDEN_D)

        for blk in range(N_BLOCKS):
            # ---- multi-head self-attention (LN affine pre-folded into qkvw/qkvb) ----
            h = _layernorm_core(x)
            # Stage the fused projection in VMEM to bound live ranges (feedback #1).
            qkv_sc[...] = (jnp.dot(h, wide_ref[blk, QKVW_R0:QKVW_R0 + HIDDEN_D, :],
                                   preferred_element_type=jnp.float32)
                           + wide_ref[blk, QKVB_R:QKVB_R + 1, :])

            # Block-diagonal grouped attention: all block_b images in one matmul per head.
            for hd in range(N_HEADS):
                q = qkv_sc[:, hd * D_HEAD:(hd + 1) * D_HEAD]                       # pre-scaled Q
                k = qkv_sc[:, HIDDEN_D + hd * D_HEAD:HIDDEN_D + (hd + 1) * D_HEAD]
                vp = qkv_sc[:, (2 + hd) * HIDDEN_D:(3 + hd) * HIDDEN_D]            # placed V
                s = lax.dot_general(q, k, (((1,), (1,)), ((), ())),
                                    preferred_element_type=jnp.float32) + bias_ref[...]
                a = _softmax(s, approx=True)                                        # (BS, BS)
                x = x + jnp.dot(a, vp, preferred_element_type=jnp.float32)          # residual

            # ---- MLP (LN affine pre-folded into w1/b1) ----
            h2 = _layernorm_core(x)
            m = (jnp.dot(h2, wide_ref[blk, W1_R0:W1_R0 + HIDDEN_D, :],
                         preferred_element_type=jnp.float32)
                 + wide_ref[blk, B1_R:B1_R + 1, :])
            m = _gelu_exact(m)
            x = x + (jnp.dot(m, narrow_ref[W2_R0 + blk * MLP_D:W2_R0 + (blk + 1) * MLP_D, :],
                             preferred_element_type=jnp.float32)
                     + narrow_ref[B2_R0 + blk * 8:B2_R0 + blk * 8 + 1, :])

        # ---- classification head on CLS rows; lane-dense (block_b, 128) store ----
        cls = jnp.concatenate([x[b * S_PAD:b * S_PAD + 1, :] for b in range(block_b)], axis=0)
        logits = (jnp.dot(cls, head_ref[HW_R0:HW_R0 + HIDDEN_D, :],
                          preferred_element_type=jnp.float32)
                  + head_ref[HB_R:HB_R + 1, :])          # dead lanes biased to -1e30 -> exp = 0
        out_ref[0] = _softmax(logits, approx=False)      # exact normalization for the output

    return vit_kernel


# ---------------- glue: patchify, host-side folding, pallas_call wrapper ----------------
def patchify(x):
    """x: (N, C, H, W) -> (N, P2, C*PS*PS), flatten order (C, ph, pw) like torch."""
    n = x.shape[0]
    x = x.reshape(n, C, N_PATCHES, PS, N_PATCHES, PS)
    x = x.transpose(0, 2, 4, 1, 3, 5)         # (N, i, j, C, ph, pw)
    return x.reshape(n, P2, INPUT_D)


def _full_spec(shape):
    r = len(shape)
    return pl.BlockSpec(shape, lambda i, _r=r: (0,) * _r)


def prepare_fused_params(P):
    """Host-side constant folding into three slabs:
       wide   (N_BLOCKS, 80, 128): block-diag fused QKV (Q pre-scaled, placed V, LN1 affine folded)
                                   + MLP first linear (LN2 affine folded), with their biases;
       narrow (368, 32)          : patch-embed weight, CLS+pos+bias base rows, w2/b2 per block;
       head   (40, 128)          : classifier weight placed in lanes 0..9, bias row with -1e30
                                   on dead lanes so the lane-dense softmax is exact."""
    scale = 1.0 / math.sqrt(D_HEAD)
    qw, qb = np.asarray(P['qw']), np.asarray(P['qb'])
    kw, kb = np.asarray(P['kw']), np.asarray(P['kb'])
    vw, vb = np.asarray(P['vw']), np.asarray(P['vb'])
    ln1g, ln1b = np.asarray(P['ln1g']), np.asarray(P['ln1b'])
    ln2g, ln2b = np.asarray(P['ln2g']), np.asarray(P['ln2b'])
    w1, b1 = np.asarray(P['w1']), np.asarray(P['b1'])
    w2, b2 = np.asarray(P['w2']), np.asarray(P['b2'])

    wide = np.zeros((N_BLOCKS, WIDE_ROWS, WIDE_LANES), np.float32)
    for blk in range(N_BLOCKS):
        w_raw = np.zeros((HIDDEN_D, QKV_D), np.float32)
        b_raw = np.zeros((QKV_D,), np.float32)
        for hd in range(N_HEADS):
            idx = blk * N_HEADS + hd
            r0 = hd * D_HEAD
            # Q (pre-scaled by 1/sqrt(d_head)), block-diagonal
            w_raw[r0:r0 + D_HEAD, r0:r0 + D_HEAD] = qw[idx] * scale
            b_raw[r0:r0 + D_HEAD] = qb[idx] * scale
            # K, block-diagonal
            w_raw[r0:r0 + D_HEAD, HIDDEN_D + r0:HIDDEN_D + r0 + D_HEAD] = kw[idx]
            b_raw[HIDDEN_D + r0:HIDDEN_D + r0 + D_HEAD] = kb[idx]
            # placed V: head hd's values land directly in its output lanes
            c0 = (2 + hd) * HIDDEN_D + r0
            w_raw[r0:r0 + D_HEAD, c0:c0 + D_HEAD] = vw[idx]
            b_raw[c0:c0 + D_HEAD] = vb[idx]
        # fold LayerNorm-1 affine into the fused QKV
        wide[blk, QKVW_R0:QKVW_R0 + HIDDEN_D, :] = ln1g[blk][:, None] * w_raw
        wide[blk, QKVB_R, :] = ln1b[blk] @ w_raw + b_raw
        # fold LayerNorm-2 affine into the MLP first linear
        wide[blk, W1_R0:W1_R0 + HIDDEN_D, :] = ln2g[blk][:, None] * w1[blk]
        wide[blk, B1_R, :] = ln2b[blk] @ w1[blk] + b1[blk]

    pos = np.asarray(P['pos'])            # (S, D)
    token = np.asarray(P['token'])        # (1, D)
    be = np.asarray(P['be'])              # (1, D)
    base = np.zeros((S_PAD, HIDDEN_D), np.float32)
    base[0] = pos[0] + token[0]           # CLS row
    base[PATCH_ROW0:] = pos[1:] + be[0]   # patch rows: pos + patch-linear bias

    narrow = np.zeros((NARROW_ROWS, HIDDEN_D), np.float32)
    narrow[WE_R0:WE_R0 + INPUT_D, :] = np.asarray(P['we'])
    narrow[BASE_R0:BASE_R0 + S_PAD, :] = base
    for blk in range(N_BLOCKS):
        narrow[W2_R0 + blk * MLP_D:W2_R0 + (blk + 1) * MLP_D, :] = w2[blk]
        narrow[B2_R0 + blk * 8, :] = b2[blk]

    head = np.zeros((HEAD_ROWS, OUT_LANES), np.float32)
    head[HW_R0:HW_R0 + HIDDEN_D, 0:OUT_D] = np.asarray(P['hw'])
    head[HB_R, :] = -1e30
    head[HB_R, 0:OUT_D] = np.asarray(P['hb'])[0]

    return dict(wide=jnp.asarray(wide), narrow=jnp.asarray(narrow), head=jnp.asarray(head))


def _make_attn_bias(block_b):
    """Additive mask (BS, BS): 0 on valid keys of the SAME image (CLS + patch rows),
       -1e30 on pad keys and all cross-image blocks."""
    bs = block_b * S_PAD
    bias = np.full((bs, bs), -1e30, np.float32)
    for b in range(block_b):
        r0 = b * S_PAD
        bias[r0:r0 + S_PAD, r0] = 0.0                              # CLS key
        bias[r0:r0 + S_PAD, r0 + PATCH_ROW0:r0 + S_PAD] = 0.0      # patch keys
    return jnp.asarray(bias)


def vit_forward(x, P, block_b=None):
    n = x.shape[0]
    if block_b is None:
        # Avoid processing all-zero padded images for small batches, and keep >= 2 grid steps
        # where possible so v7x's second TensorCore has work.  MAX_BLOCK_B*S_PAD == 128 rows.
        block_b = max(1, min(MAX_BLOCK_B, n // 2))
    n_pad = ((n + block_b - 1) // block_b) * block_b
    steps = n_pad // block_b

    F = prepare_fused_params(P)
    attn_bias = _make_attn_bias(block_b)

    patches = patchify(x).astype(jnp.float32)                      # (n, P2, INPUT_D)
    if n_pad != n:
        patches = jnp.concatenate(
            [patches, jnp.zeros((n_pad - n, P2, INPUT_D), jnp.float32)], axis=0)
    patches2d = patches.reshape(n_pad * P2, INPUT_D)

    args = (patches2d, F['wide'], F['narrow'], attn_bias, F['head'])
    in_specs = [pl.BlockSpec((block_b * P2, INPUT_D), lambda i: (i, 0))]
    in_specs += [_full_spec(a.shape) for a in args[1:]]            # weights resident across steps

    out = pl.pallas_call(
        _make_kernel(block_b),
        out_shape=jax.ShapeDtypeStruct((steps, block_b, OUT_LANES), jnp.float32),
        grid_spec=pltpu.PrefetchScalarGridSpec(
            num_scalar_prefetch=0,
            grid=(steps,),
            in_specs=in_specs,
            out_specs=pl.BlockSpec((1, block_b, OUT_LANES), lambda i: (i, 0, 0)),
            scratch_shapes=[pltpu.VMEM((block_b * S_PAD, QKV_D), jnp.float32)],
        ),
        compiler_params=pltpu.CompilerParams(dimension_semantics=("parallel",)),
    )(*args)
    # lane-dense output slab -> (N, OUT_D) probabilities
    return out.reshape(n_pad, OUT_LANES)[:n, :OUT_D]


# ---------------- deterministic parameter construction ----------------
def get_positional_embeddings(seq_len, d):
    pe = np.ones((seq_len, d), dtype=np.float32)
    for i in range(seq_len):
        for j in range(d):
            if j % 2 == 0:
                pe[i, j] = math.sin(i / 10000 ** (j / d))
            else:
                pe[i, j] = math.cos(i / 10000 ** ((j - 1) / d))
    return jnp.asarray(pe)


def init_params(key):
    ks = jax.random.split(key, 16)
    nh = N_BLOCKS * N_HEADS
    # Linear weights stored as (in, out) so forward computes x @ W + b.
    P = dict(
        we=0.05 * jax.random.normal(ks[0], (INPUT_D, HIDDEN_D), jnp.float32),
        be=0.05 * jax.random.normal(ks[1], (1, HIDDEN_D), jnp.float32),
        token=jax.random.normal(ks[2], (1, HIDDEN_D), jnp.float32),
        pos=get_positional_embeddings(S, HIDDEN_D),
        ln1g=jnp.ones((N_BLOCKS, HIDDEN_D), jnp.float32),
        ln1b=jnp.zeros((N_BLOCKS, HIDDEN_D), jnp.float32),
        qw=0.1 * jax.random.normal(ks[3], (nh, D_HEAD, D_HEAD), jnp.float32),
        qb=0.05 * jax.random.normal(ks[4], (nh, D_HEAD), jnp.float32),
        kw=0.1 * jax.random.normal(ks[5], (nh, D_HEAD, D_HEAD), jnp.float32),
        kb=0.05 * jax.random.normal(ks[6], (nh, D_HEAD), jnp.float32),
        vw=0.1 * jax.random.normal(ks[7], (nh, D_HEAD, D_HEAD), jnp.float32),
        vb=0.05 * jax.random.normal(ks[8], (nh, D_HEAD), jnp.float32),
        ln2g=jnp.ones((N_BLOCKS, HIDDEN_D), jnp.float32),
        ln2b=jnp.zeros((N_BLOCKS, HIDDEN_D), jnp.float32),
        w1=0.05 * jax.random.normal(ks[9], (N_BLOCKS, HIDDEN_D, MLP_D), jnp.float32),
        b1=0.05 * jax.random.normal(ks[10], (N_BLOCKS, MLP_D), jnp.float32),
        w2=0.05 * jax.random.normal(ks[11], (N_BLOCKS, MLP_D, HIDDEN_D), jnp.float32),
        b2=0.05 * jax.random.normal(ks[12], (N_BLOCKS, HIDDEN_D), jnp.float32),
        hw=0.1 * jax.random.normal(ks[13], (HIDDEN_D, OUT_D), jnp.float32),
        hb=0.05 * jax.random.normal(ks[14], (1, OUT_D), jnp.float32),
    )
    return P


# ---------------- pure-JAX reference (mirrors the PyTorch forward) ----------------
def reference_forward(x, P):
    hp = jax.lax.Precision.HIGHEST
    n = x.shape[0]
    patches = patchify(x).astype(jnp.float32)
    tokens = jnp.einsum('npi,id->npd', patches, P['we'], precision=hp) + P['be']
    cls = jnp.broadcast_to(P['token'][None], (n, 1, HIDDEN_D))
    t = jnp.concatenate([cls, tokens], axis=1) + P['pos'][None]
    for blk in range(N_BLOCKS):
        mu = jnp.mean(t, -1, keepdims=True)
        var = jnp.mean((t - mu) ** 2, -1, keepdims=True)
        h = (t - mu) / jnp.sqrt(var + LN_EPS) * P['ln1g'][blk] + P['ln1b'][blk]
        heads = []
        for hd in range(N_HEADS):
            idx = blk * N_HEADS + hd
            seq = h[:, :, hd * D_HEAD:(hd + 1) * D_HEAD]
            q = jnp.einsum('nsd,de->nse', seq, P['qw'][idx], precision=hp) + P['qb'][idx]
            k = jnp.einsum('nsd,de->nse', seq, P['kw'][idx], precision=hp) + P['kb'][idx]
            v = jnp.einsum('nsd,de->nse', seq, P['vw'][idx], precision=hp) + P['vb'][idx]
            sc = jnp.einsum('nqd,nkd->nqk', q, k, precision=hp) / math.sqrt(D_HEAD)
            att = jax.nn.softmax(sc, axis=-1)
            heads.append(jnp.einsum('nqk,nkd->nqd', att, v, precision=hp))
        t = t + jnp.concatenate(heads, axis=-1)
        mu = jnp.mean(t, -1, keepdims=True)
        var = jnp.mean((t - mu) ** 2, -1, keepdims=True)
        h2 = (t - mu) / jnp.sqrt(var + LN_EPS) * P['ln2g'][blk] + P['ln2b'][blk]
        m = jnp.einsum('nsd,df->nsf', h2, P['w1'][blk], precision=hp) + P['b1'][blk]
        m = 0.5 * m * (1.0 + lax.erf(m / math.sqrt(2.0)))
        m = jnp.einsum('nsf,fd->nsd', m, P['w2'][blk], precision=hp) + P['b2'][blk]
        t = t + m
    cls_tok = t[:, 0]
    logits = jnp.einsum('nd,do->no', cls_tok, P['hw'], precision=hp) + P['hb']
    return jax.nn.softmax(logits, axis=-1)


# ---------------- main ----------------
if __name__ == "__main__":
    key = jax.random.PRNGKey(0)
    k_x, k_p = jax.random.split(key)
    N = 2
    x = jax.random.normal(k_x, (N, C, H, W), jnp.float32)   # NCHW, like PyTorch
    params = init_params(k_p)

    out = vit_forward(x, params)
    out = jax.block_until_ready(out)

    ref = reference_forward(x, params)
    assert out.shape == (N, OUT_D)
    assert np.allclose(np.asarray(out), np.asarray(ref), atol=2e-3, rtol=2e-2), (
        f"mismatch: max abs diff {np.max(np.abs(np.asarray(out) - np.asarray(ref)))}")

    print("KERNEL_OK")
</pallas_src>

<mosaic_0001>
module attributes {stable_mosaic.version = 11 : i64} {
  func.func @vit_kernel(%arg0: i32, %arg1: memref<16x64xf32, #tpu.memory_space<vmem>>, %arg2: memref<2x80x128xf32, #tpu.memory_space<vmem>>, %arg3: memref<368x32xf32, #tpu.memory_space<vmem>>, %arg4: memref<32x32xf32, #tpu.memory_space<vmem>>, %arg5: memref<40x128xf32, #tpu.memory_space<vmem>>, %arg6: memref<1x1x128xf32, #tpu.memory_space<vmem>>, %arg7: memref<32x128xf32, #tpu.memory_space<vmem>>) attributes {dimension_semantics = [#tpu.dimension_semantics<parallel>], iteration_bounds = array<i64: 2>, scalar_prefetch = 0 : i64, scratch_operands = 1 : i64, tpu.core_type = #tpu.core_type<tc>, window_params = [{transform_indices = @transform_0, window_bounds = array<i64: 16, 64>}, {pipeline_mode = #tpu.pipeline_mode<synchronous>, transform_indices = @transform_1, window_bounds = array<i64: 2, 80, 128>}, {pipeline_mode = #tpu.pipeline_mode<synchronous>, transform_indices = @transform_2, window_bounds = array<i64: 368, 32>}, {pipeline_mode = #tpu.pipeline_mode<synchronous>, transform_indices = @transform_3, window_bounds = array<i64: 32, 32>}, {pipeline_mode = #tpu.pipeline_mode<synchronous>, transform_indices = @transform_4, window_bounds = array<i64: 40, 128>}, {transform_indices = @transform_5, window_bounds = array<i64: 1, 1, 128>}]} {
    %c0 = arith.constant 0 : index
    %c0_0 = arith.constant 0 : index
    %0 = vector.load %arg1[%c0, %c0_0] : memref<16x64xf32, #tpu.memory_space<vmem>>, vector<16x64xf32>
    %c0_1 = arith.constant 0 : index
    %c0_2 = arith.constant 0 : index
    %1 = vector.load %arg3[%c0_1, %c0_2] : memref<368x32xf32, #tpu.memory_space<vmem>>, vector<64x32xf32>
    %cst = arith.constant dense<0.000000e+00> : vector<16x32xf32>
    %2 = tpu.matmul %0, %1, %cst {dimension_numbers = #tpu.dot_dimension_numbers<[1], [0], [0], [1], [0, 0, 1, 1], [], []>} : vector<16x64xf32>, vector<64x32xf32>, vector<16x32xf32> -> vector<16x32xf32>
    %c64 = arith.constant 64 : index
    %c0_3 = arith.constant 0 : index
    %3 = vector.load %arg3[%c64, %c0_3] : memref<368x32xf32, #tpu.memory_space<vmem>>, vector<16x32xf32>
    %c80 = arith.constant 80 : index
    %c0_4 = arith.constant 0 : index
    %4 = vector.load %arg3[%c80, %c0_4] : memref<368x32xf32, #tpu.memory_space<vmem>>, vector<16x32xf32>
    %5 = arith.addf %4, %2 : vector<16x32xf32>
    %6 = tpu.concatenate %3, %5 in 0 : vector<16x32xf32>, vector<16x32xf32> -> vector<32x32xf32>
    %cst_5 = arith.constant dense<0.000000e+00> : vector<32xf32>
    %7 = vector.multi_reduction <add>, %6, %cst_5 [1] : vector<32x32xf32> to vector<32xf32>
    %8 = vector.shape_cast %7 : vector<32xf32> to vector<32x1xf32>
    %cst_6 = arith.constant 3.200000e+01 : f32
    %9 = vector.broadcast %cst_6 : f32 to vector<32x1xf32>
    %10 = arith.divf %8, %9 : vector<32x1xf32>
    %11 = vector.broadcast %10 : vector<32x1xf32> to vector<32x32xf32>
    %12 = arith.subf %6, %11 : vector<32x32xf32>
    %13 = arith.mulf %12, %12 : vector<32x32xf32>
    %cst_7 = arith.constant dense<0.000000e+00> : vector<32xf32>
    %14 = vector.multi_reduction <add>, %13, %cst_7 [1] : vector<32x32xf32> to vector<32xf32>
    %15 = vector.shape_cast %14 : vector<32xf32> to vector<32x1xf32>
    %cst_8 = arith.constant 3.200000e+01 : f32
    %16 = vector.broadcast %cst_8 : f32 to vector<32x1xf32>
    %17 = arith.divf %15, %16 : vector<32x1xf32>
    %18 = vector.broadcast %10 : vector<32x1xf32> to vector<32x32xf32>
    %19 = arith.subf %6, %18 : vector<32x32xf32>
    %cst_9 = arith.constant 9.99999974E-6 : f32
    %20 = vector.broadcast %cst_9 : f32 to vector<32x1xf32>
    %21 = arith.addf %17, %20 : vector<32x1xf32>
    %22 = math.rsqrt %21 : vector<32x1xf32>
    %23 = vector.broadcast %22 : vector<32x1xf32> to vector<32x32xf32>
    %24 = arith.mulf %19, %23 : vector<32x32xf32>
    %c0_10 = arith.constant 0 : index
    %c0_11 = arith.constant 0 : index
    %c0_12 = arith.constant 0 : index
    %25 = vector.load %arg2[%c0_10, %c0_11, %c0_12] : memref<2x80x128xf32, #tpu.memory_space<vmem>>, vector<1x32x128xf32>
    %26 = vector.shape_cast %25 : vector<1x32x128xf32> to vector<32x128xf32>
    %cst_13 = arith.constant dense<0.000000e+00> : vector<32x128xf32>
    %27 = tpu.matmul %24, %26, %cst_13 {dimension_numbers = #tpu.dot_dimension_numbers<[1], [0], [0], [1], [0, 0, 1, 1], [], []>} : vector<32x32xf32>, vector<32x128xf32>, vector<32x128xf32> -> vector<32x128xf32>
    %c0_14 = arith.constant 0 : index
    %c32 = arith.constant 32 : index
    %c0_15 = arith.constant 0 : index
    %28 = vector.load %arg2[%c0_14, %c32, %c0_15] : memref<2x80x128xf32, #tpu.memory_space<vmem>>, vector<1x1x128xf32>
    %29 = vector.shape_cast %28 : vector<1x1x128xf32> to vector<1x128xf32>
    %30 = vector.broadcast %29 : vector<1x128xf32> to vector<32x128xf32>
    %31 = arith.addf %27, %30 : vector<32x128xf32>
    %c0_16 = arith.constant 0 : index
    %c0_17 = arith.constant 0 : index
    %32 = vector.load %arg7[%c0_16, %c0_17] : memref<32x128xf32, #tpu.memory_space<vmem>>, vector<32x128xf32>
    tpu.vector_store %arg7[%c0_16, %c0_17], %31 {strides = array<i32>} : memref<32x128xf32, #tpu.memory_space<vmem>>, vector<32x128xf32>,
    %c0_18 = arith.constant 0 : index
    %c0_19 = arith.constant 0 : index
    %33 = vector.load %arg7[%c0_18, %c0_19] : memref<32x128xf32, #tpu.memory_space<vmem>>, vector<32x16xf32>
    %c0_20 = arith.constant 0 : index
    %c32_21 = arith.constant 32 : index
    %34 = vector.load %arg7[%c0_20, %c32_21] : memref<32x128xf32, #tpu.memory_space<vmem>>, vector<32x16xf32>
    %c0_22 = arith.constant 0 : index
    %c64_23 = arith.constant 64 : index
    %35 = vector.load %arg7[%c0_22, %c64_23] : memref<32x128xf32, #tpu.memory_space<vmem>>, vector<32x32xf32>
    %cst_24 = arith.constant dense<0.000000e+00> : vector<32x32xf32>
    %36 = tpu.matmul %33, %34, %cst_24 {dimension_numbers = #tpu.dot_dimension_numbers<[1], [1], [0], [0], [0, 0, 1, 0], [], []>} : vector<32x16xf32>, vector<32x16xf32>, vector<32x32xf32> -> vector<32x32xf32>
    %c0_25 = arith.constant 0 : index
    %c0_26 = arith.constant 0 : index
    %37 = vector.load %arg4[%c0_25, %c0_26] : memref<32x32xf32, #tpu.memory_space<vmem>>, vector<32x32xf32>
    %38 = arith.addf %36, %37 : vector<32x32xf32>
    %cst_27 = arith.constant dense<0xFF800000> : vector<32xf32>
    %39 = vector.multi_reduction <maximumf>, %38, %cst_27 [1] : vector<32x32xf32> to vector<32xf32>
    %40 = vector.shape_cast %39 : vector<32xf32> to vector<32x1xf32>
    %41 = vector.broadcast %40 : vector<32x1xf32> to vector<32x32xf32>
    %42 = arith.subf %38, %41 : vector<32x32xf32>
    %43 = math.exp %42 : vector<32x32xf32>
    %cst_28 = arith.constant dense<0.000000e+00> : vector<32xf32>
    %44 = vector.multi_reduction <add>, %43, %cst_28 [1] : vector<32x32xf32> to vector<32xf32>
    %45 = vector.shape_cast %44 : vector<32xf32> to vector<32x1xf32>
    %46 = tpu.reciprocal %45 {approx = true} : vector<32x1xf32> -> vector<32x1xf32>
    %47 = vector.broadcast %46 : vector<32x1xf32> to vector<32x32xf32>
    %48 = arith.mulf %43, %47 : vector<32x32xf32>
    %cst_29 = arith.constant dense<0.000000e+00> : vector<32x32xf32>
    %49 = tpu.matmul %48, %35, %cst_29 {dimension_numbers = #tpu.dot_dimension_numbers<[1], [0], [0], [1], [0, 0, 1, 1], [], []>} : vector<32x32xf32>, vector<32x32xf32>, vector<32x32xf32> -> vector<32x32xf32>
    %50 = arith.addf %6, %49 : vector<32x32xf32>
    %c0_30 = arith.constant 0 : index
    %c16 = arith.constant 16 : index
    %51 = vector.load %arg7[%c0_30, %c16] : memref<32x128xf32, #tpu.memory_space<vmem>>, vector<32x16xf32>
    %c0_31 = arith.constant 0 : index
    %c48 = arith.constant 48 : index
    %52 = vector.load %arg7[%c0_31, %c48] : memref<32x128xf32, #tpu.memory_space<vmem>>, vector<32x16xf32>
    %c0_32 = arith.constant 0 : index
    %c96 = arith.constant 96 : index
    %53 = vector.load %arg7[%c0_32, %c96] : memref<32x128xf32, #tpu.memory_space<vmem>>, vector<32x32xf32>
    %cst_33 = arith.constant dense<0.000000e+00> : vector<32x32xf32>
    %54 = tpu.matmul %51, %52, %cst_33 {dimension_numbers = #tpu.dot_dimension_numbers<[1], [1], [0], [0], [0, 0, 1, 0], [], []>} : vector<32x16xf32>, vector<32x16xf32>, vector<32x32xf32> -> vector<32x32xf32>
    %c0_34 = arith.constant 0 : index
    %c0_35 = arith.constant 0 : index
    %55 = vector.load %arg4[%c0_34, %c0_35] : memref<32x32xf32, #tpu.memory_space<vmem>>, vector<32x32xf32>
    %56 = arith.addf %54, %55 : vector<32x32xf32>
    %cst_36 = arith.constant dense<0xFF800000> : vector<32xf32>
    %57 = vector.multi_reduction <maximumf>, %56, %cst_36 [1] : vector<32x32xf32> to vector<32xf32>
    %58 = vector.shape_cast %57 : vector<32xf32> to vector<32x1xf32>
    %59 = vector.broadcast %58 : vector<32x1xf32> to vector<32x32xf32>
    %60 = arith.subf %56, %59 : vector<32x32xf32>
    %61 = math.exp %60 : vector<32x32xf32>
    %cst_37 = arith.constant dense<0.000000e+00> : vector<32xf32>
    %62 = vector.multi_reduction <add>, %61, %cst_37 [1] : vector<32x32xf32> to vector<32xf32>
    %63 = vector.shape_cast %62 : vector<32xf32> to vector<32x1xf32>
    %64 = tpu.reciprocal %63 {approx = true} : vector<32x1xf32> -> vector<32x1xf32>
    %65 = vector.broadcast %64 : vector<32x1xf32> to vector<32x32xf32>
    %66 = arith.mulf %61, %65 : vector<32x32xf32>
    %cst_38 = arith.constant dense<0.000000e+00> : vector<32x32xf32>
    %67 = tpu.matmul %66, %53, %cst_38 {dimension_numbers = #tpu.dot_dimension_numbers<[1], [0], [0], [1], [0, 0, 1, 1], [], []>} : vector<32x32xf32>, vector<32x32xf32>, vector<32x32xf32> -> vector<32x32xf32>
    %68 = arith.addf %50, %67 : vector<32x32xf32>
    %cst_39 = arith.constant dense<0.000000e+00> : vector<32xf32>
    %69 = vector.multi_reduction <add>, %68, %cst_39 [1] : vector<32x32xf32> to vector<32xf32>
    %70 = vector.shape_cast %69 : vector<32xf32> to vector<32x1xf32>
    %cst_40 = arith.constant 3.200000e+01 : f32
    %71 = vector.broadcast %cst_40 : f32 to vector<32x1xf32>
    %72 = arith.divf %70, %71 : vector<32x1xf32>
    %73 = vector.broadcast %72 : vector<32x1xf32> to vector<32x32xf32>
    %74 = arith.subf %68, %73 : vector<32x32xf32>
    %75 = arith.mulf %74, %74 : vector<32x32xf32>
    %cst_41 = arith.constant dense<0.000000e+00> : vector<32xf32>
    %76 = vector.multi_reduction <add>, %75, %cst_41 [1] : vector<32x32xf32> to vector<32xf32>
    %77 = vector.shape_cast %76 : vector<32xf32> to vector<32x1xf32>
    %cst_42 = arith.constant 3.200000e+01 : f32
    %78 = vector.broadcast %cst_42 : f32 to vector<32x1xf32>
    %79 = arith.divf %77, %78 : vector<32x1xf32>
    %80 = vector.broadcast %72 : vector<32x1xf32> to vector<32x32xf32>
    %81 = arith.subf %68, %80 : vector<32x32xf32>
    %cst_43 = arith.constant 9.99999974E-6 : f32
    %82 = vector.broadcast %cst_43 : f32 to vector<32x1xf32>
    %83 = arith.addf %79, %82 : vector<32x1xf32>
    %84 = math.rsqrt %83 : vector<32x1xf32>
    %85 = vector.broadcast %84 : vector<32x1xf32> to vector<32x32xf32>
    %86 = arith.mulf %81, %85 : vector<32x32xf32>
    %c0_44 = arith.constant 0 : index
    %c40 = arith.constant 40 : index
    %c0_45 = arith.constant 0 : index
    %87 = vector.load %arg2[%c0_44, %c40, %c0_45] : memref<2x80x128xf32, #tpu.memory_space<vmem>>, vector<1x32x128xf32>
    %88 = vector.shape_cast %87 : vector<1x32x128xf32> to vector<32x128xf32>
    %cst_46 = arith.constant dense<0.000000e+00> : vector<32x128xf32>
    %89 = tpu.matmul %86, %88, %cst_46 {dimension_numbers = #tpu.dot_dimension_numbers<[1], [0], [0], [1], [0, 0, 1, 1], [], []>} : vector<32x32xf32>, vector<32x128xf32>, vector<32x128xf32> -> vector<32x128xf32>
    %c0_47 = arith.constant 0 : index
    %c72 = arith.constant 72 : index
    %c0_48 = arith.constant 0 : index
    %90 = vector.load %arg2[%c0_47, %c72, %c0_48] : memref<2x80x128xf32, #tpu.memory_space<vmem>>, vector<1x1x128xf32>
    %91 = vector.shape_cast %90 : vector<1x1x128xf32> to vector<1x128xf32>
    %92 = vector.broadcast %91 : vector<1x128xf32> to vector<32x128xf32>
    %93 = arith.addf %89, %92 : vector<32x128xf32>
    %cst_49 = arith.constant 5.000000e-01 : f32
    %94 = vector.broadcast %cst_49 : f32 to vector<32x128xf32>
    %95 = arith.mulf %94, %93 : vector<32x128xf32>
    %cst_50 = arith.constant 0.707106769 : f32
    %96 = vector.broadcast %cst_50 : f32 to vector<32x128xf32>
    %97 = arith.mulf %93, %96 : vector<32x128xf32>
    %98 = math.erf %97 : vector<32x128xf32>
    %cst_51 = arith.constant 1.000000e+00 : f32
    %99 = vector.broadcast %cst_51 : f32 to vector<32x128xf32>
    %100 = arith.addf %99, %98 : vector<32x128xf32>
    %101 = arith.mulf %95, %100 : vector<32x128xf32>
    %c96_52 = arith.constant 96 : index
    %c0_53 = arith.constant 0 : index
    %102 = vector.load %arg3[%c96_52, %c0_53] : memref<368x32xf32, #tpu.memory_space<vmem>>, vector<128x32xf32>
    %cst_54 = arith.constant dense<0.000000e+00> : vector<32x32xf32>
    %103 = tpu.matmul %101, %102, %cst_54 {dimension_numbers = #tpu.dot_dimension_numbers<[1], [0], [0], [1], [0, 0, 1, 1], [], []>} : vector<32x128xf32>, vector<128x32xf32>, vector<32x32xf32> -> vector<32x32xf32>
    %c352 = arith.constant 352 : index
    %c0_55 = arith.constant 0 : index
    %104 = vector.load %arg3[%c352, %c0_55] : memref<368x32xf32, #tpu.memory_space<vmem>>, vector<1x32xf32>
    %105 = vector.broadcast %104 : vector<1x32xf32> to vector<32x32xf32>
    %106 = arith.addf %103, %105 : vector<32x32xf32>
    %107 = arith.addf %68, %106 : vector<32x32xf32>
    %cst_56 = arith.constant dense<0.000000e+00> : vector<32xf32>
    %108 = vector.multi_reduction <add>, %107, %cst_56 [1] : vector<32x32xf32> to vector<32xf32>
    %109 = vector.shape_cast %108 : vector<32xf32> to vector<32x1xf32>
    %cst_57 = arith.constant 3.200000e+01 : f32
    %110 = vector.broadcast %cst_57 : f32 to vector<32x1xf32>
    %111 = arith.divf %109, %110 : vector<32x1xf32>
    %112 = vector.broadcast %111 : vector<32x1xf32> to vector<32x32xf32>
    %113 = arith.subf %107, %112 : vector<32x32xf32>
    %114 = arith.mulf %113, %113 : vector<32x32xf32>
    %cst_58 = arith.constant dense<0.000000e+00> : vector<32xf32>
    %115 = vector.multi_reduction <add>, %114, %cst_58 [1] : vector<32x32xf32> to vector<32xf32>
    %116 = vector.shape_cast %115 : vector<32xf32> to vector<32x1xf32>
    %cst_59 = arith.constant 3.200000e+01 : f32
    %117 = vector.broadcast %cst_59 : f32 to vector<32x1xf32>
    %118 = arith.divf %116, %117 : vector<32x1xf32>
    %119 = vector.broadcast %111 : vector<32x1xf32> to vector<32x32xf32>
    %120 = arith.subf %107, %119 : vector<32x32xf32>
    %cst_60 = arith.constant 9.99999974E-6 : f32
    %121 = vector.broadcast %cst_60 : f32 to vector<32x1xf32>
    %122 = arith.addf %118, %121 : vector<32x1xf32>
    %123 = math.rsqrt %122 : vector<32x1xf32>
    %124 = vector.broadcast %123 : vector<32x1xf32> to vector<32x32xf32>
    %125 = arith.mulf %120, %124 : vector<32x32xf32>
    %c1 = arith.constant 1 : index
    %c0_61 = arith.constant 0 : index
    %c0_62 = arith.constant 0 : index
    %126 = vector.load %arg2[%c1, %c0_61, %c0_62] : memref<2x80x128xf32, #tpu.memory_space<vmem>>, vector<1x32x128xf32>
    %127 = vector.shape_cast %126 : vector<1x32x128xf32> to vector<32x128xf32>
    %cst_63 = arith.constant dense<0.000000e+00> : vector<32x128xf32>
    %128 = tpu.matmul %125, %127, %cst_63 {dimension_numbers = #tpu.dot_dimension_numbers<[1], [0], [0], [1], [0, 0, 1, 1], [], []>} : vector<32x32xf32>, vector<32x128xf32>, vector<32x128xf32> -> vector<32x128xf32>
    %c1_64 = arith.constant 1 : index
    %c32_65 = arith.constant 32 : index
    %c0_66 = arith.constant 0 : index
    %129 = vector.load %arg2[%c1_64, %c32_65, %c0_66] : memref<2x80x128xf32, #tpu.memory_space<vmem>>, vector<1x1x128xf32>
    %130 = vector.shape_cast %129 : vector<1x1x128xf32> to vector<1x128xf32>
    %131 = vector.broadcast %130 : vector<1x128xf32> to vector<32x128xf32>
    %132 = arith.addf %128, %131 : vector<32x128xf32>
    %c0_67 = arith.constant 0 : index
    %c0_68 = arith.constant 0 : index
    %133 = vector.load %arg7[%c0_67, %c0_68] : memref<32x128xf32, #tpu.memory_space<vmem>>, vector<32x128xf32>
    tpu.vector_store %arg7[%c0_67, %c0_68], %132 {strides = array<i32>} : memref<32x128xf32, #tpu.memory_space<vmem>>, vector<32x128xf32>,
    %c0_69 = arith.constant 0 : index
    %c0_70 = arith.constant 0 : index
    %134 = vector.load %arg7[%c0_69, %c0_70] : memref<32x128xf32, #tpu.memory_space<vmem>>, vector<32x16xf32>
    %c0_71 = arith.constant 0 : index
    %c32_72 = arith.constant 32 : index
    %135 = vector.load %arg7[%c0_71, %c32_72] : memref<32x128xf32, #tpu.memory_space<vmem>>, vector<32x16xf32>
    %c0_73 = arith.constant 0 : index
    %c64_74 = arith.constant 64 : index
    %136 = vector.load %arg7[%c0_73, %c64_74] : memref<32x128xf32, #tpu.memory_space<vmem>>, vector<32x32xf32>
    %cst_75 = arith.constant dense<0.000000e+00> : vector<32x32xf32>
    %137 = tpu.matmul %134, %135, %cst_75 {dimension_numbers = #tpu.dot_dimension_numbers<[1], [1], [0], [0], [0, 0, 1, 0], [], []>} : vector<32x16xf32>, vector<32x16xf32>, vector<32x32xf32> -> vector<32x32xf32>
    %c0_76 = arith.constant 0 : index
    %c0_77 = arith.constant 0 : index
    %138 = vector.load %arg4[%c0_76, %c0_77] : memref<32x32xf32, #tpu.memory_space<vmem>>, vector<32x32xf32>
    %139 = arith.addf %137, %138 : vector<32x32xf32>
    %cst_78 = arith.constant dense<0xFF800000> : vector<32xf32>
    %140 = vector.multi_reduction <maximumf>, %139, %cst_78 [1] : vector<32x32xf32> to vector<32xf32>
    %141 = vector.shape_cast %140 : vector<32xf32> to vector<32x1xf32>
    %142 = vector.broadcast %141 : vector<32x1xf32> to vector<32x32xf32>
    %143 = arith.subf %139, %142 : vector<32x32xf32>
    %144 = math.exp %143 : vector<32x32xf32>
    %cst_79 = arith.constant dense<0.000000e+00> : vector<32xf32>
    %145 = vector.multi_reduction <add>, %144, %cst_79 [1] : vector<32x32xf32> to vector<32xf32>
    %146 = vector.shape_cast %145 : vector<32xf32> to vector<32x1xf32>
    %147 = tpu.reciprocal %146 {approx = true} : vector<32x1xf32> -> vector<32x1xf32>
    %148 = vector.broadcast %147 : vector<32x1xf32> to vector<32x32xf32>
    %149 = arith.mulf %144, %148 : vector<32x32xf32>
    %cst_80 = arith.constant dense<0.000000e+00> : vector<32x32xf32>
    %150 = tpu.matmul %149, %136, %cst_80 {dimension_numbers = #tpu.dot_dimension_numbers<[1], [0], [0], [1], [0, 0, 1, 1], [], []>} : vector<32x32xf32>, vector<32x32xf32>, vector<32x32xf32> -> vector<32x32xf32>
    %151 = arith.addf %107, %150 : vector<32x32xf32>
    %c0_81 = arith.constant 0 : index
    %c16_82 = arith.constant 16 : index
    %152 = vector.load %arg7[%c0_81, %c16_82] : memref<32x128xf32, #tpu.memory_space<vmem>>, vector<32x16xf32>
    %c0_83 = arith.constant 0 : index
    %c48_84 = arith.constant 48 : index
    %153 = vector.load %arg7[%c0_83, %c48_84] : memref<32x128xf32, #tpu.memory_space<vmem>>, vector<32x16xf32>
    %c0_85 = arith.constant 0 : index
    %c96_86 = arith.constant 96 : index
    %154 = vector.load %arg7[%c0_85, %c96_86] : memref<32x128xf32, #tpu.memory_space<vmem>>, vector<32x32xf32>
    %cst_87 = arith.constant dense<0.000000e+00> : vector<32x32xf32>
    %155 = tpu.matmul %152, %153, %cst_87 {dimension_numbers = #tpu.dot_dimension_numbers<[1], [1], [0], [0], [0, 0, 1, 0], [], []>} : vector<32x16xf32>, vector<32x16xf32>, vector<32x32xf32> -> vector<32x32xf32>
    %c0_88 = arith.constant 0 : index
    %c0_89 = arith.constant 0 : index
    %156 = vector.load %arg4[%c0_88, %c0_89] : memref<32x32xf32, #tpu.memory_space<vmem>>, vector<32x32xf32>
    %157 = arith.addf %155, %156 : vector<32x32xf32>
    %cst_90 = arith.constant dense<0xFF800000> : vector<32xf32>
    %158 = vector.multi_reduction <maximumf>, %157, %cst_90 [1] : vector<32x32xf32> to vector<32xf32>
    %159 = vector.shape_cast %158 : vector<32xf32> to vector<32x1xf32>
    %160 = vector.broadcast %159 : vector<32x1xf32> to vector<32x32xf32>
    %161 = arith.subf %157, %160 : vector<32x32xf32>
    %162 = math.exp %161 : vector<32x32xf32>
    %cst_91 = arith.constant dense<0.000000e+00> : vector<32xf32>
    %163 = vector.multi_reduction <add>, %162, %cst_91 [1] : vector<32x32xf32> to vector<32xf32>
    %164 = vector.shape_cast %163 : vector<32xf32> to vector<32x1xf32>
    %165 = tpu.reciprocal %164 {approx = true} : vector<32x1xf32> -> vector<32x1xf32>
    %166 = vector.broadcast %165 : vector<32x1xf32> to vector<32x32xf32>
    %167 = arith.mulf %162, %166 : vector<32x32xf32>
    %cst_92 = arith.constant dense<0.000000e+00> : vector<32x32xf32>
    %168 = tpu.matmul %167, %154, %cst_92 {dimension_numbers = #tpu.dot_dimension_numbers<[1], [0], [0], [1], [0, 0, 1, 1], [], []>} : vector<32x32xf32>, vector<32x32xf32>, vector<32x32xf32> -> vector<32x32xf32>
    %169 = arith.addf %151, %168 : vector<32x32xf32>
    %cst_93 = arith.constant dense<0.000000e+00> : vector<32xf32>
    %170 = vector.multi_reduction <add>, %169, %cst_93 [1] : vector<32x32xf32> to vector<32xf32>
    %171 = vector.shape_cast %170 : vector<32xf32> to vector<32x1xf32>
    %cst_94 = arith.constant 3.200000e+01 : f32
    %172 = vector.broadcast %cst_94 : f32 to vector<32x1xf32>
    %173 = arith.divf %171, %172 : vector<32x1xf32>
    %174 = vector.broadcast %173 : vector<32x1xf32> to vector<32x32xf32>
    %175 = arith.subf %169, %174 : vector<32x32xf32>
    %176 = arith.mulf %175, %175 : vector<32x32xf32>
    %cst_95 = arith.constant dense<0.000000e+00> : vector<32xf32>
    %177 = vector.multi_reduction <add>, %176, %cst_95 [1] : vector<32x32xf32> to vector<32xf32>
    %178 = vector.shape_cast %177 : vector<32xf32> to vector<32x1xf32>
    %cst_96 = arith.constant 3.200000e+01 : f32
    %179 = vector.broadcast %cst_96 : f32 to vector<32x1xf32>
    %180 = arith.divf %178, %179 : vector<32x1xf32>
    %181 = vector.broadcast %173 : vector<32x1xf32> to vector<32x32xf32>
    %182 = arith.subf %169, %181 : vector<32x32xf32>
    %cst_97 = arith.constant 9.99999974E-6 : f32
    %183 = vector.broadcast %cst_97 : f32 to vector<32x1xf32>
    %184 = arith.addf %180, %183 : vector<32x1xf32>
    %185 = math.rsqrt %184 : vector<32x1xf32>
    %186 = vector.broadcast %185 : vector<32x1xf32> to vector<32x32xf32>
    %187 = arith.mulf %182, %186 : vector<32x32xf32>
    %c1_98 = arith.constant 1 : index
    %c40_99 = arith.constant 40 : index
    %c0_100 = arith.constant 0 : index
    %188 = vector.load %arg2[%c1_98, %c40_99, %c0_100] : memref<2x80x128xf32, #tpu.memory_space<vmem>>, vector<1x32x128xf32>
    %189 = vector.shape_cast %188 : vector<1x32x128xf32> to vector<32x128xf32>
    %cst_101 = arith.constant dense<0.000000e+00> : vector<32x128xf32>
    %190 = tpu.matmul %187, %189, %cst_101 {dimension_numbers = #tpu.dot_dimension_numbers<[1], [0], [0], [1], [0, 0, 1, 1], [], []>} : vector<32x32xf32>, vector<32x128xf32>, vector<32x128xf32> -> vector<32x128xf32>
    %c1_102 = arith.constant 1 : index
    %c72_103 = arith.constant 72 : index
    %c0_104 = arith.constant 0 : index
    %191 = vector.load %arg2[%c1_102, %c72_103, %c0_104] : memref<2x80x128xf32, #tpu.memory_space<vmem>>, vector<1x1x128xf32>
    %192 = vector.shape_cast %191 : vector<1x1x128xf32> to vector<1x128xf32>
    %193 = vector.broadcast %192 : vector<1x128xf32> to vector<32x128xf32>
    %194 = arith.addf %190, %193 : vector<32x128xf32>
    %cst_105 = arith.constant 5.000000e-01 : f32
    %195 = vector.broadcast %cst_105 : f32 to vector<32x128xf32>
    %196 = arith.mulf %195, %194 : vector<32x128xf32>
    %cst_106 = arith.constant 0.707106769 : f32
    %197 = vector.broadcast %cst_106 : f32 to vector<32x128xf32>
    %198 = arith.mulf %194, %197 : vector<32x128xf32>
    %199 = math.erf %198 : vector<32x128xf32>
    %cst_107 = arith.constant 1.000000e+00 : f32
    %200 = vector.broadcast %cst_107 : f32 to vector<32x128xf32>
    %201 = arith.addf %200, %199 : vector<32x128xf32>
    %202 = arith.mulf %196, %201 : vector<32x128xf32>
    %c224 = arith.constant 224 : index
    %c0_108 = arith.constant 0 : index
    %203 = vector.load %arg3[%c224, %c0_108] : memref<368x32xf32, #tpu.memory_space<vmem>>, vector<128x32xf32>
    %cst_109 = arith.constant dense<0.000000e+00> : vector<32x32xf32>
    %204 = tpu.matmul %202, %203, %cst_109 {dimension_numbers = #tpu.dot_dimension_numbers<[1], [0], [0], [1], [0, 0, 1, 1], [], []>} : vector<32x128xf32>, vector<128x32xf32>, vector<32x32xf32> -> vector<32x32xf32>
    %c360 = arith.constant 360 : index
    %c0_110 = arith.constant 0 : index
    %205 = vector.load %arg3[%c360, %c0_110] : memref<368x32xf32, #tpu.memory_space<vmem>>, vector<1x32xf32>
    %206 = vector.broadcast %205 : vector<1x32xf32> to vector<32x32xf32>
    %207 = arith.addf %204, %206 : vector<32x32xf32>
    %208 = arith.addf %169, %207 : vector<32x32xf32>
    %209 = vector.extract_strided_slice %208 {offsets = [0, 0], sizes = [1, 32], strides = [1, 1]} : vector<32x32xf32> to vector<1x32xf32>
    %c0_111 = arith.constant 0 : index
    %c0_112 = arith.constant 0 : index
    %210 = vector.load %arg5[%c0_111, %c0_112] : memref<40x128xf32, #tpu.memory_space<vmem>>, vector<32x128xf32>
    %cst_113 = arith.constant dense<0.000000e+00> : vector<1x128xf32>
    %211 = tpu.matmul %209, %210, %cst_113 {dimension_numbers = #tpu.dot_dimension_numbers<[1], [0], [0], [1], [0, 0, 1, 1], [], []>} : vector<1x32xf32>, vector<32x128xf32>, vector<1x128xf32> -> vector<1x128xf32>
    %c32_114 = arith.constant 32 : index
    %c0_115 = arith.constant 0 : index
    %212 = vector.load %arg5[%c32_114, %c0_115] : memref<40x128xf32, #tpu.memory_space<vmem>>, vector<1x128xf32>
    %213 = arith.addf %211, %212 : vector<1x128xf32>
    %cst_116 = arith.constant dense<0xFF800000> : vector<1xf32>
    %214 = vector.multi_reduction <maximumf>, %213, %cst_116 [1] : vector<1x128xf32> to vector<1xf32>
    %215 = vector.shape_cast %214 : vector<1xf32> to vector<1x1xf32>
    %216 = vector.broadcast %215 : vector<1x1xf32> to vector<1x128xf32>
    %217 = arith.subf %213, %216 : vector<1x128xf32>
    %218 = math.exp %217 : vector<1x128xf32>
    %cst_117 = arith.constant dense<0.000000e+00> : vector<1xf32>
    %219 = vector.multi_reduction <add>, %218, %cst_117 [1] : vector<1x128xf32> to vector<1xf32>
    %220 = vector.shape_cast %219 : vector<1xf32> to vector<1x1xf32>
    %221 = vector.broadcast %220 : vector<1x1xf32> to vector<1x128xf32>
    %222 = arith.divf %218, %221 : vector<1x128xf32>
    %c0_118 = arith.constant 0 : index
    %c0_119 = arith.constant 0 : index
    %c0_120 = arith.constant 0 : index
    %223 = vector.load %arg6[%c0_118, %c0_119, %c0_120] : memref<1x1x128xf32, #tpu.memory_space<vmem>>, vector<1x1x128xf32>
    %224 = vector.shape_cast %223 : vector<1x1x128xf32> to vector<1x128xf32>
    %225 = vector.shape_cast %222 : vector<1x128xf32> to vector<1x1x128xf32>
    tpu.vector_store %arg6[%c0_118, %c0_119, %c0_120], %225 {strides = array<i32>} : memref<1x1x128xf32, #tpu.memory_space<vmem>>, vector<1x1x128xf32>,
    return
  }
  func.func @transform_0(%arg0: i32) -> (i32, i32) {
    %c0_i32 = arith.constant 0 : i32
    %c0_i32_0 = arith.constant 0 : i32
    return %arg0, %c0_i32 : i32, i32
  }
  func.func @transform_1(%arg0: i32) -> (i32, i32, i32) {
    %c0_i32 = arith.constant 0 : i32
    %c0_i32_0 = arith.constant 0 : i32
    %c0_i32_1 = arith.constant 0 : i32
    %c0_i32_2 = arith.constant 0 : i32
    return %c0_i32, %c0_i32_0, %c0_i32_1 : i32, i32, i32
  }
  func.func @transform_2(%arg0: i32) -> (i32, i32) {
    %c0_i32 = arith.constant 0 : i32
    %c0_i32_0 = arith.constant 0 : i32
    %c0_i32_1 = arith.constant 0 : i32
    return %c0_i32, %c0_i32_0 : i32, i32
  }
  func.func @transform_3(%arg0: i32) -> (i32, i32) {
    %c0_i32 = arith.constant 0 : i32
    %c0_i32_0 = arith.constant 0 : i32
    %c0_i32_1 = arith.constant 0 : i32
    return %c0_i32, %c0_i32_0 : i32, i32
  }
  func.func @transform_4(%arg0: i32) -> (i32, i32) {
    %c0_i32 = arith.constant 0 : i32
    %c0_i32_0 = arith.constant 0 : i32
    %c0_i32_1 = arith.constant 0 : i32
    return %c0_i32, %c0_i32_0 : i32, i32
  }
  func.func @transform_5(%arg0: i32) -> (i32, i32, i32) {
    %c0_i32 = arith.constant 0 : i32
    %c0_i32_0 = arith.constant 0 : i32
    %c0_i32_1 = arith.constant 0 : i32
    return %arg0, %c0_i32, %c0_i32_0 : i32, i32, i32
  }
}

</mosaic_0001>

<bundles_post_ra>
// kernel: tpu_custom_call.1
= control target key start
LH: loop header
LB: loop body
LE: loop exit
PB: predicated region body
PF: predicated region fallthrough
CT: control target
= control target key end

     0   :  { %10 = vsyncpa [#allocation4], 0  ;;  %s3274_s0 = inlined_call_operand.vmem [shape: f32[32,64], index: 0, kind: input, shape index: {}]   ;;  %s3275_s1 = inlined_call_operand.vmem [shape: f32[2,80,128], index: 1, kind: input, shape index: {}]   ;;  %s3276_s2 = inlined_call_operand.vmem [shape: f32[368,32], index: 2, kind: input, shape index: {}]   ;;  %s3277_s3 = inlined_call_operand.vmem [shape: f32[32,32], index: 3, kind: input, shape index: {}]   ;;  %s3278_s4 = inlined_call_operand.vmem [shape: f32[40,128], index: 4, kind: input, shape index: {}]   ;;  %s3279_s5 = inlined_call_operand.hbm [shape: f32[2,1,128], index: 5, kind: output, shape index: {}]  }
   0x1   :  { %12 = vsyncpa [#allocation4 + $0x1], 0  ;;  %s2456_s18 = smov 0   ;;  %s2458_s19 = smov 0  }
   0x2   :  { %s2460_s20 = smov 0   ;;  %s2462_s21 = smov 0  }
   0x3 LB: > { %s2477_s22 = sadd.s32 4294967295, %s2418_s21   ;;  %s2054_s23 = sadd.s32 4294967294, %s2418_s21   ;;  %s2418_s21 = sphi %s2462_s21, %s3285_s21   ;;  %s2414_s20 = sphi %s2460_s20, %s3284_s20   ;;  %s2410_s19 = sphi %s2458_s19, %s3283_s19   ;;  %s2406_s18 = sphi %s2456_s18, %s3282_s18  }
   0x4   : > { %s2481_s24 = sadd.s32 1, %s2418_s21   ;;  %s135_s25 = sadd.s32 1, %s2414_s20 }
   0x5   : > { %s132_s26 = ssub.s32 %s2418_s21, %s2481_s24  ;;  %p145_p0 = scmp.ne.s32.totalorder %s2414_s20, %s2410_s19 }
   0x6   : > { %p133_p1 = scmp.eq.s32.totalorder %s132_s26, 0  ;;  %p146_p2 = scmp.eq.s32.totalorder %s2477_s22, 1 }
   0x7   : > { %p151_p3 = scmp.ne.s32.totalorder %s2410_s19, %s2406_s18  ;;  %p152_p4 = scmp.eq.s32.totalorder %s2054_s23, 1 }
   0x8   : > { %s2492_s27 = scalar_select %p133_p1, %s2414_s20, %s135_s25  }
   0x9   : > { %p2494_p5 = por %p146_p2, %p145_p0  ;;  %p2498_p6 = por %p152_p4, %p151_p3 }
   0xa   : > { %p2057_p7 = scmp.ge.s32.totalorder %s2418_s21, 1  ;;  %p191_p8 = scmp.lt.s32.totalorder %s2418_s21, 3 }
   0xc   : > { %p192_p9 = pnand %p2057_p7, %p191_p8 }
   0xd   : > { %s2058_s11 = sshll.u32 (!%p192_p9), %s2477_s22, 1  ;;  %s2421_s13 = smov (!%p192_p9), 96  }
   0xe   : > { %195 = sbr.rel (%p192_p9) target bundleno = 3904 (0xf40), region = 40  ;;  %p219_p10 = scmp.lt.s32.totalorder (!%p192_p9), %s2058_s11, 3 }
   0xf   : > { %s2422_s14 = smov (!%p192_p9), 80   ;;  %s2424_s7 = smov (!%p192_p9), 64  }
  0x10   : > { %s2425_s8 = smov (!%p192_p9), 32   ;;  %s2376_s15 = scalar_lea.hbm (!%p192_p9), %s3279_s5, 2 }
  0x13   : > { %v233_v0 = vld [vmem:[%s3276_s2 + $0x38] sm:$0xff]  ;;  %v2510_v1 = vld [vmem:[%s3276_s2 + $0x40] sm:$0xff]  ;;  %vm270_vm0 = vcmask 261120   ;;  %v232_v2 = vld [vmem:[%s3276_s2 + $0x30] sm:$0xff]  ;;  %s3287_s11 = smov (!%p219_p10, %s2058_s11), 3  ;;  %vm234_vm1 = vcmask 523264  }
  0x14   : > { %249 = vmatpush.msra.mxu0 %v233_v0  ;;  %v271_v3 = vsel %vm270_vm0, %v2510_v1, 0.0  ;;  %v231_v4 = vld [vmem:[%s3276_s2 + $0x28] sm:$0xff]  ;;  %v230_v5 = vld [vmem:[%s3276_s2 + $0x20] sm:$0xff]  ;;  %v229_v7 = vld [vmem:[%s3276_s2 + $0x18] sm:$0xff]  ;;  %s2059_s26 = sshll.u32 %s3287_s11, 3  ;;  %v2420_v14 = vmov 32.0  }
  0x15   : > { %272 = vadd.xlane.f32.xlu0 %v271_v3  ;;  %v2527_v6 = vld [vmem:[%s3276_s2 + $0x48] sm:$0xff]  ;;  %v228_v9 = vld [vmem:[%s3276_s2 + $0x10] sm:$0xff]  ;;  %s222_s12 = scalar_lea.vmem %s3274_s0, %s2059_s26  ;;  %v226_v11 = vld [vmem:[%s3276_s2] sm:$0xff]  ;;  %2238 = vrcp.f32 %v2420_v14  ;;  %s2423_s11 = smov 112   ;;  %vm437_vm15 = vcmask 130048  }
  0x16   : > { %250 = vmatpush.msra.mxu0 %v232_v2  ;;  %v274_v8 = vsel %vm270_vm0, %v2527_v6, 0.0  ;;  %v227_v10 = vld [vmem:[%s3276_s2 + $0x8] sm:$0xff]  ;;  %v224_v12 = vld [vmem:[%s222_s12] sm:$0xff]  ;;  %v266_v31 = vld [vmem:[%s3276_s2 + $0x50] sm:$0xff]  ;;  %s216_s26 = sand.u32 1, %s2410_s19  }
  0x17   : > { %v225_v13 = vld [vmem:[%s222_s12 + $0x8] sm:$0xff]  ;;  %v267_v35 = vld [vmem:[%s3276_s2 + $0x58] sm:$0xff]  ;;  %v368_v40 = vld [vmem:[%s3275_s1 + $0x10] sm:$0xff]  ;;  %s217_s6 = scalar_lea.vmem [#allocation3], %s216_s26 }
  0x18   : > { %251 = vmatpush.msra.mxu0 %v231_v4  ;;  %v369_v39 = vld [vmem:[%s3275_s1 + $0x18] sm:$0xff]  ;;  %v367_v41 = vld [vmem:[%s3275_s1 + $0x8] sm:$0xff]  ;;  %v366_v42 = vld [vmem:[%s3275_s1] sm:$0xff]  ;;  %s1997_s9 = sshll.u32 %s217_s6, 4  ;;  %s1998_s9 = int_to_ptr.vmem [resolvable:$true] %s1997_s9 }
  0x19   : > { %396 = vmatpush.msra.mxu1 %v369_v39 }
  0x1a   : > { %252 = vmatpush.msra.mxu0 %v230_v5 }
  0x1b   : > { %v2239_v15 = vpop.eup %2238  ;;  %397 = vmatpush.msra.mxu1 %v368_v40 }
  0x1c   : > { %253 = vmatpush.msra.mxu0 %v229_v7  ;;  %v284_v16 = vmul.f32 32.0, %v2239_v15  ;;  %vm288_vm2 = vweird.f32 %v2239_v15 }
  0x1d   : > { %275 = vadd.xlane.f32.xlu0 %v274_v8  ;;  %398 = vmatpush.msra.mxu1 %v367_v41 }
  0x1e   : > { %254 = vmatpush.msra.mxu0 %v228_v9  ;;  %v285_v17 = vsub.f32 1.0, %v284_v16 }
  0x1f   : > { %399 = vmatpush.msra.mxu1 %v366_v42 }
  0x20   : > { %255 = vmatpush.msra.mxu0 %v227_v10  ;;  %v286_v18 = vmul.f32 %v2239_v15, %v285_v17 }
  0x22   : > { %256 = vmatpush.msra.mxu0 %v226_v11  ;;  %v287_v19 = vadd.f32 %v2239_v15, %v286_v18 }
  0x23   : > { %2060 = vmatmul.msk.f32.vlgmr.msra.gmra.mxu0 %vm234_vm1, %v224_v12 }
  0x24   : > { %v2546_v20 = vsel %vm288_vm2, %v2239_v15, %v287_v19 }
  0x2b   : > { %2061 = vmatmul.msk.f32.gmra.mxu0 %vm234_vm1, %v225_v13 }
  0x88   : > { %v273_v21 = vpop.xlane.xlu0 %272 }
  0x89   : > { %v290_v22 = vmul.f32 %v2546_v20, %v273_v21 }
  0x8b   : > { %v294_v23 = vsub.f32 %v2510_v1, %v290_v22 }
  0x8d   : > { %v298_v24 = vmul.f32 %v294_v23, %v294_v23 }
  0x8f   : > { %v302_v25 = vsel %vm270_vm0, %v298_v24, 0.0  ;;  %v2232_v24 = vld [vmem:[%s3275_s1 + $0x20] ss:$0 sm:$0xff] }
  0x90   : > { %303 = vadd.xlane.f32.xlu2 %v302_v25  ;;  %v276_v26 = vpop.xlane.xlu0 %275 }
  0x91   : > { %v291_v27 = vmul.f32 %v2546_v20, %v276_v26 }
  0x93   : > { %v295_v28 = vsub.f32 %v2527_v6, %v291_v27 }
  0x95   : > { %v299_v29 = vmul.f32 %v295_v28, %v295_v28 }
  0x97   : > { %v305_v30 = vsel %vm270_vm0, %v299_v29, 0.0 }
  0x98   : > { %306 = vadd.xlane.f32.xlu2 %v305_v30 }
  0xa0   : > { %v258_v32 = vpop.f32.mrf.mxu0 }
  0xa1   : > { %v2557_v33 = vadd.f32 %v266_v31, %v258_v32 }
  0xa3   : > { %v277_v34 = vsel %vm270_vm0, %v2557_v33, 0.0 }
  0xa4   : > { %278 = vadd.xlane.f32.xlu1 %v277_v34 }
  0xa8   : > { %v261_v36 = vpop.f32.mrf.mxu0 }
  0xa9   : > { %v2564_v37 = vadd.f32 %v267_v35, %v261_v36 }
  0xab   : > { %v280_v38 = vsel %vm270_vm0, %v2564_v37, 0.0 }
  0xac   : > { %281 = vadd.xlane.f32.xlu1 %v280_v38 }
 0x103   : > { %v304_v43 = vpop.xlane.xlu2 %303 }
 0x104   : > { %v314_v44 = vmul.f32 %v304_v43, %v2546_v20 }
 0x106   : > { %v318_v45 = vadd.f32 1e-05, %v314_v44 }
 0x108   : > { %2240 = vrsqrt.f32 %v318_v45  ;;  %vm328_vm3 = vweird.f32 %v318_v45 }
 0x10b   : > { %v307_v46 = vpop.xlane.xlu2 %306 }
 0x10c   : > { %v315_v47 = vmul.f32 %v307_v46, %v2546_v20 }
 0x10e   : > { %v2241_v48 = vpop.eup %2240  ;;  %v319_v49 = vadd.f32 1e-05, %v315_v47 }
 0x10f   : > { %v323_v50 = vmul.f32 %v2241_v48, %v318_v45  ;;  %vm329_vm4 = vweird.f32 %v2241_v48 }
 0x110   : > { %2242 = vrsqrt.f32 %v319_v49  ;;  %vm330_vm5 = vmor %vm328_vm3, %vm329_vm4  ;;  %vm338_vm6 = vweird.f32 %v319_v49 }
 0x111   : > { %v324_v51 = vmul.f32 %v2241_v48, %v323_v50 }
 0x113   : > { %v325_v52 = vmul.f32 0.5, %v324_v51 }
 0x115   : > { %v326_v53 = vsub.f32 1.5, %v325_v52 }
 0x116   : > { %v2243_v54 = vpop.eup %2242 }
 0x117   : > { %v333_v55 = vmul.f32 %v2243_v54, %v319_v49  ;;  %v279_v56 = vpop.xlane.xlu1 %278  ;;  %v327_v57 = vmul.f32 %v2241_v48, %v326_v53  ;;  %vm339_vm7 = vweird.f32 %v2243_v54 }
 0x118   : > { %v292_v58 = vmul.f32 %v2546_v20, %v279_v56  ;;  %vm340_vm8 = vmor %vm338_vm6, %vm339_vm7 }
 0x119   : > { %v334_v59 = vmul.f32 %v2243_v54, %v333_v55  ;;  %v331_v60 = vsel %vm330_vm5, %v2241_v48, %v327_v57 }
 0x11a   : > { %v296_v61 = vsub.f32 %v2557_v33, %v292_v58  ;;  %v362_v62 = vmul.f32 %v331_v60, %v294_v23 }
 0x11b   : > { %v335_v63 = vmul.f32 0.5, %v334_v59  ;;  %v421_v59 = vld [vmem:[%s3277_s3] sm:$0xff] }
 0x11c   : > { %2062 = vmatmul.msk.f32.vlgmr.msra.gmra.mxu1 %vm270_vm0, %v362_v62  ;;  %v300_v0 = vmul.f32 %v296_v61, %v296_v61 }
 0x11d   : > { %v336_v2 = vsub.f32 1.5, %v335_v63 }
 0x11e   : > { %v308_v3 = vsel %vm270_vm0, %v300_v0, 0.0 }
 0x11f   : > { %309 = vadd.xlane.f32.xlu0 %v308_v3  ;;  %v282_v4 = vpop.xlane.xlu1 %281  ;;  %v337_v5 = vmul.f32 %v2243_v54, %v336_v2 }
 0x120   : > { %v293_v7 = vmul.f32 %v2546_v20, %v282_v4  ;;  %v422_v4 = vld [vmem:[%s3277_s3 + $0x8] sm:$0xff] }
 0x121   : > { %v341_v8 = vsel %vm340_vm8, %v2243_v54, %v337_v5 }
 0x122   : > { %v297_v9 = vsub.f32 %v2564_v37, %v293_v7  ;;  %v363_v10 = vmul.f32 %v341_v8, %v295_v28 }
 0x124   : > { %2063 = vmatmul.msk.f32.gmra.mxu1 %vm270_vm0, %v363_v10  ;;  %v301_v11 = vmul.f32 %v297_v9, %v297_v9 }
 0x126   : > { %v311_v12 = vsel %vm270_vm0, %v301_v11, 0.0  ;;  %v423_v11 = vld [vmem:[%s3277_s3 + $0x10] sm:$0xff] }
 0x127   : > { %312 = vadd.xlane.f32.xlu1 %v311_v12 }
 0x192   : > { %v310_v13 = vpop.xlane.xlu0 %309 }
 0x193   : > { %v316_v14 = vmul.f32 %v310_v13, %v2546_v20  ;;  %v424_v13 = vld [vmem:[%s3277_s3 + $0x18] sm:$0xff] }
 0x195   : > { %v320_v15 = vadd.f32 1e-05, %v316_v14 }
 0x197   : > { %2244 = vrsqrt.f32 %v320_v15  ;;  %vm348_vm10 = vweird.f32 %v320_v15 }
 0x199   : > { %v401_v16 = vpop.f32.mrf.mxu1 }
 0x19a   : > { %v313_v17 = vpop.xlane.xlu1 %312  ;;  %v2615_v46 = vadd.f32 %v2232_v24, %v401_v16 }
 0x19b   : > { %v317_v18 = vmul.f32 %v313_v17, %v2546_v20 }
 0x19d   : > { %v2245_v19 = vpop.eup %2244  ;;  %v321_v21 = vadd.f32 1e-05, %v317_v18 }
 0x19e   : > { %v343_v22 = vmul.f32 %v2245_v19, %v320_v15  ;;  %vm349_vm9 = vweird.f32 %v2245_v19 }
 0x19f   : > { %2246 = vrsqrt.f32 %v321_v21  ;;  %vm350_vm11 = vmor %vm348_vm10, %vm349_vm9  ;;  %vm358_vm13 = vweird.f32 %v321_v21 }
 0x1a0   : > { %v344_v23 = vmul.f32 %v2245_v19, %v343_v22 }
 0x1a1   : > { %v404_v25 = vpop.f32.mrf.mxu1 }
 0x1a2   : > { %v345_v26 = vmul.f32 0.5, %v344_v23  ;;  %v2595_v27 = vadd.f32 %v2232_v24, %v404_v25 }
 0x1a4   : > { %v346_v28 = vsub.f32 1.5, %v345_v26  ;;  %431 = vrot.lane.b32.xlu1 %v2595_v27, %s2421_s13  ;;  %v2197_v23 = vpack.i.bf16 %v2615_v46, %v2595_v27 }
 0x1a5   : > { %v2247_v29 = vpop.eup %2246 }
 0x1a6   : > { %v353_v30 = vmul.f32 %v2247_v29, %v321_v21  ;;  %v347_v31 = vmul.f32 %v2245_v19, %v346_v28  ;;  %vm359_vm12 = vweird.f32 %v2247_v29 }
 0x1a7   : > { %vm360_vm14 = vmor %vm358_vm13, %vm359_vm12 }
 0x1a8   : > { %v354_v32 = vmul.f32 %v2247_v29, %v353_v30  ;;  %v351_v34 = vsel %vm350_vm11, %v2245_v19, %v347_v31 }
 0x1a9   : > { %v364_v35 = vmul.f32 %v351_v34, %v296_v61 }
 0x1aa   : > { %v355_v36 = vmul.f32 0.5, %v354_v32 }
 0x1ab   : > { %2064 = vmatmul.msk.f32.gmra.mxu1 %vm270_vm0, %v364_v35 }
 0x1ac   : > { %v356_v38 = vsub.f32 1.5, %v355_v36  ;;  %594 = vrot.lane.b32.xlu1 %v2595_v27, %s2422_s14 }
 0x1ae   : > { %v357_v39 = vmul.f32 %v2247_v29, %v356_v38 }
 0x1b0   : > { %v361_v40 = vsel %vm360_vm14, %v2247_v29, %v357_v39 }
 0x1b1   : > { %v365_v41 = vmul.f32 %v361_v40, %v297_v9 }
 0x1b3   : > { %2065 = vmatmul.msk.f32.gmra.mxu1 %vm270_vm0, %v365_v41 }
 0x1b4   : > { %586 = vrot.lane.b32.xlu1 %v2595_v27, %s2423_s11 }
 0x216   : > { %v432_v50 = vpop.permute.xlu1 %431 }
 0x21e   : > { %v595_v53 = vpop.permute.xlu1 %594 }
 0x226   : > { %v587_v56 = vpop.permute.xlu1 %586 }
 0x228   : > { %v407_v42 = vpop.f32.mrf.mxu1 }
 0x229   : > { %v2605_v43 = vadd.f32 %v2232_v24, %v407_v42 }
 0x22b   : > { %433 = vrot.lane.b32.xlu0 %v2605_v43, %s2421_s13 }
 0x230   : > { %v410_v44 = vpop.f32.mrf.mxu1 }
 0x231   : > { %v2609_v45 = vadd.f32 %v2232_v24, %v410_v44 }
 0x233   : > { %598 = vrot.lane.b32.xlu0 %v2609_v45, %s2422_s14  ;;  %435 = vrot.lane.b32.xlu2 %v2609_v45, %s2421_s13  ;;  %v2192_v24 = vpack.i.bf16 %v2605_v43, %v2609_v45 }
 0x23b   : > { %592 = vrot.lane.b32.xlu0 %v2615_v46, %s2422_s14  ;;  %429 = vrot.lane.b32.xlu2 %v2615_v46, %s2421_s13 }
 0x243   : > { %588 = vrot.lane.b32.xlu0 %v2605_v43, %s2423_s11  ;;  %596 = vrot.lane.b32.xlu2 %v2605_v43, %s2422_s14 }
 0x24b   : > { %584 = vrot.lane.b32.xlu2 %v2615_v46, %s2423_s11 }
 0x253   : > { %590 = vrot.lane.b32.xlu2 %v2609_v45, %s2423_s11 }
 0x28d   : > { %v436_v47 = vpop.permute.xlu2 %435 }
 0x28e   : > { %2066 = vmatpush.xpose.msk.msra.mxu2 %vm437_vm15, %v436_v47 }
 0x295   : > { %v430_v49 = vpop.permute.xlu2 %429 }
 0x29d   : > { %v434_v48 = vpop.permute.xlu0 %433  ;;  %v597_v52 = vpop.permute.xlu2 %596 }
 0x29e   : > { %2067 = vmatpush.xpose.msk.msra.mxu2 %vm437_vm15, %v434_v48 }
 0x2a2   : > { %2068 = vmatpush.xpose.msk.msra.mxu2 %vm437_vm15, %v432_v50 }
 0x2a5   : > { %v599_v51 = vpop.permute.xlu0 %598  ;;  %v585_v55 = vpop.permute.xlu2 %584 }
 0x2a6   : > { %2069 = vmatpush.xpose.msk.msra.mxu2 %vm437_vm15, %v430_v49  ;;  %2078 = vmatpush.xpose.msk.msrb.mxu0 %vm437_vm15, %v599_v51 }
 0x2a9   : > { %2070 = vmatmul.msk.f32.vlgmr.msra.gmra.mxu2 %vm437_vm15, %v2615_v46 }
 0x2aa   : > { %2079 = vmatpush.xpose.msk.msrb.mxu0 %vm437_vm15, %v597_v52 }
 0x2ad   : > { %v593_v54 = vpop.permute.xlu0 %592  ;;  %v591_v58 = vpop.permute.xlu2 %590 }
 0x2ae   : > { %2080 = vmatpush.xpose.msk.msrb.mxu0 %vm437_vm15, %v595_v53 }
 0x2b1   : > { %2071 = vmatmul.msk.f32.gmra.mxu2 %vm437_vm15, %v2595_v27 }
 0x2b2   : > { %2081 = vmatpush.xpose.msk.msrb.mxu0 %vm437_vm15, %v593_v54 }
 0x2b5   : > { %2082 = vmatmul.msk.f32.vlgmr.msrb.gmra.mxu0 %vm437_vm15, %v585_v55  ;;  %v589_v57 = vpop.permute.xlu0 %588 }
 0x2b9   : > { %2072 = vmatmul.msk.f32.gmra.mxu2 %vm437_vm15, %v2605_v43 }
 0x2bd   : > { %2083 = vmatmul.msk.f32.gmra.mxu0 %vm437_vm15, %v587_v56 }
 0x2c1   : > { %2073 = vmatmul.msk.f32.gmra.mxu2 %vm437_vm15, %v2609_v45 }
 0x2c5   : > { %2084 = vmatmul.msk.f32.gmra.mxu0 %vm437_vm15, %v589_v57 }
 0x2cd   : > { %2085 = vmatmul.msk.f32.gmra.mxu0 %vm437_vm15, %v591_v58 }
 0x32c   : > { %v471_v60 = vpop.f32.mrf.mxu2 }
 0x32d   : > { %v472_v61 = vadd.f32 %v471_v60, %v421_v59 }
 0x32f   : > { %v483_v62 = vsel %vm270_vm0, %v472_v61, -inf }
 0x330   : > { %484 = vmax.xlane.f32.xlu1 %v483_v62 }
 0x332   : > { %v633_v63 = vpop.f32.mrf.mxu0 }
 0x333   : > { %v634_v0 = vadd.f32 %v633_v63, %v421_v59 }
 0x334   : > { %v474_v2 = vpop.f32.mrf.mxu2 }
 0x335   : > { %v645_v3 = vsel %vm270_vm0, %v634_v0, -inf  ;;  %v475_v10 = vadd.f32 %v474_v2, %v422_v4 }
 0x336   : > { %646 = vmax.xlane.f32.xlu2 %v645_v3 }
 0x337   : > { %v486_v18 = vsel %vm270_vm0, %v475_v10, -inf }
 0x33a   : > { %v636_v5 = vpop.f32.mrf.mxu0 }
 0x33b   : > { %v637_v7 = vadd.f32 %v636_v5, %v422_v4 }
 0x33c   : > { %v477_v8 = vpop.f32.mrf.mxu2 }
 0x33d   : > { %v648_v9 = vsel %vm270_vm0, %v637_v7, -inf  ;;  %v478_v21 = vadd.f32 %v477_v8, %v423_v11 }
 0x33e   : > { %649 = vmax.xlane.f32.xlu0 %v648_v9 }
 0x33f   : > { %v489_v22 = vsel %vm270_vm0, %v478_v21, -inf }
 0x342   : > { %v639_v12 = vpop.f32.mrf.mxu0 }
 0x343   : > { %v640_v14 = vadd.f32 %v639_v12, %v423_v11 }
 0x344   : > { %v480_v15 = vpop.f32.mrf.mxu2 }
 0x345   : > { %v2664_v16 = vadd.f32 %v480_v15, %v424_v13  ;;  %v651_v17 = vsel %vm270_vm0, %v640_v14, -inf }
 0x346   : > { %652 = vmax.xlane.f32.xlu1 %v651_v17  ;;  %487 = vmax.xlane.f32.xlu0 %v486_v18 }
 0x347   : > { %v492_v19 = vsel %vm270_vm0, %v2664_v16, -inf }
 0x348   : > { %493 = vmax.xlane.f32.xlu2 %v492_v19 }
 0x34a   : > { %v642_v25 = vpop.f32.mrf.mxu0 }
 0x34b   : > { %v2677_v26 = vadd.f32 %v642_v25, %v424_v13 }
 0x34d   : > { %v654_v28 = vsel %vm270_vm0, %v2677_v26, -inf }
 0x34e   : > { %490 = vmax.xlane.f32.xlu1 %v489_v22 }
 0x35a   : > { %2198 = vrot.lane.b32.xlu0 %v2197_v23, %s2424_s7 }
 0x367   : > { %2193 = vrot.lane.b32.xlu1 %v2192_v24, %s2424_s7 }
 0x384   : > { %655 = vmax.xlane.f32.xlu0 %v654_v28 }
 0x398   : > { %2208 = vrot.lane.b32.xlu0 %v2197_v23, %s2425_s8 }
 0x3a3   : > { %v485_v29 = vpop.xlane.xlu1 %484 }
 0x3a4   : > { %v495_v31 = vsub.f32 %v472_v61, %v485_v29 }
 0x3a6   : > { %v499_v34 = vmul.f32 1.442695, %v495_v31 }
 0x3a9   : > { %v647_v27 = vpop.xlane.xlu2 %646 }
 0x3aa   : > { %v657_v30 = vsub.f32 %v634_v0, %v647_v27 }
 0x3ac   : > { %v661_v32 = vmul.f32 1.442695, %v657_v30 }
 0x3ae   : > { %2248 = vpow2.f32 %v661_v32 }
 0x3af   : > { %2250 = vpow2.f32 %v499_v34 }
 0x3b1   : > { %v650_v35 = vpop.xlane.xlu0 %649 }
 0x3b2   : > { %v658_v36 = vsub.f32 %v637_v7, %v650_v35 }
 0x3b4   : > { %v2682_v38 = vpop.eup %2248  ;;  %v663_v39 = vmul.f32 1.442695, %v658_v36 }
 0x3b5   : > { %v669_v40 = vsel %vm270_vm0, %v2682_v38, 0.0  ;;  %v2251_v43 = vpop.eup %2250 }
 0x3b6   : > { %670 = vadd.xlane.f32.xlu2 %v669_v40  ;;  %2252 = vpow2.f32 %v663_v39  ;;  %v507_v46 = vsel %vm270_vm0, %v2251_v43, 0.0 }
 0x3b9   : > { %v488_v41 = vpop.xlane.xlu0 %487  ;;  %v653_v42 = vpop.xlane.xlu1 %652 }
 0x3ba   : > { %v496_v44 = vsub.f32 %v475_v10, %v488_v41  ;;  %v659_v52 = vsub.f32 %v640_v14, %v653_v42 }
 0x3bb   : > { %v494_v3 = vpop.xlane.xlu2 %493 }
 0x3bc   : > { %v501_v45 = vmul.f32 1.442695, %v496_v44  ;;  %v2687_v47 = vpop.eup %2252  ;;  %v665_v55 = vmul.f32 1.442695, %v659_v52  ;;  %v498_v4 = vsub.f32 %v2664_v16, %v494_v3 }
 0x3bd   : > { %v672_v49 = vsel %vm270_vm0, %v2687_v47, 0.0 }
 0x3be   : > { %2254 = vpow2.f32 %v501_v45  ;;  %508 = vadd.xlane.f32.xlu2 %v507_v46  ;;  %v505_v8 = vmul.f32 1.442695, %v498_v4 }
 0x3c1   : > { %v491_v48 = vpop.xlane.xlu1 %490 }
 0x3c2   : > { %v497_v50 = vsub.f32 %v478_v21, %v491_v48  ;;  %673 = vadd.xlane.f32.xlu0 %v672_v49 }
 0x3c4   : > { %v2255_v51 = vpop.eup %2254  ;;  %v503_v53 = vmul.f32 1.442695, %v497_v50 }
 0x3c5   : > { %v510_v54 = vsel %vm270_vm0, %v2255_v51, 0.0 }
 0x3c6   : > { %2256 = vpow2.f32 %v503_v53  ;;  %511 = vadd.xlane.f32.xlu2 %v510_v54 }
 0x3c7   : > { %2258 = vpow2.f32 %v665_v55 }
 0x3cc   : > { %v2257_v56 = vpop.eup %2256  ;;  %v2199_v62 = vpop.permute.xlu0 %2198 }
 0x3cd   : > { %v513_v57 = vsel %vm270_vm0, %v2257_v56, 0.0  ;;  %v2693_v58 = vpop.eup %2258  ;;  %v2200_v0 = vunpack.i.l.bf16 %v2199_v62  ;;  %v2201_v2 = vunpack.i.h.bf16 %v2199_v62 }
 0x3ce   : > { %514 = vadd.xlane.f32.xlu1 %v513_v57  ;;  %v675_v59 = vsel %vm270_vm0, %v2693_v58, 0.0 }
 0x3d6   : > { %676 = vadd.xlane.f32.xlu1 %v675_v59 }
 0x3d9   : > { %v2194_v60 = vpop.permute.xlu1 %2193 }
 0x3da   : > { %v2195_v61 = vunpack.i.l.bf16 %v2194_v60  ;;  %v2196_v63 = vunpack.i.h.bf16 %v2194_v60 }
 0x3dc   : > { %563 = vmatpush.msra.mxu3 %v2195_v61 }
 0x3de   : > { %2203 = vrot.lane.b32.xlu2 %v2192_v24, %s2425_s8  ;;  %564 = vmatpush.msra.mxu3 %v2196_v63 }
 0x3e0   : > { %565 = vmatpush.msra.mxu3 %v2200_v0 }
 0x3e2   : > { %566 = vmatpush.msra.mxu3 %v2201_v2 }
 0x3f7   : > { %v656_v5 = vpop.xlane.xlu0 %655 }
 0x3f8   : > { %v660_v7 = vsub.f32 %v2677_v26, %v656_v5 }
 0x3fa   : > { %v667_v9 = vmul.f32 1.442695, %v660_v7 }
 0x3fc   : > { %2260 = vpow2.f32 %v667_v9 }
 0x3fd   : > { %2262 = vpow2.f32 %v505_v8 }
 0x402   : > { %v2261_v10 = vpop.eup %2260 }
 0x403   : > { %v2263_v11 = vpop.eup %2262  ;;  %v678_v12 = vsel %vm270_vm0, %v2261_v10, 0.0 }
 0x404   : > { %679 = vadd.xlane.f32.xlu0 %v678_v12  ;;  %v516_v13 = vsel %vm270_vm0, %v2263_v11, 0.0 }
 0x407   : > { %517 = vadd.xlane.f32.xlu2 %v516_v13 }
 0x40a   : > { %v2209_v19 = vpop.permute.xlu0 %2208 }
 0x40b   : > { %v2210_v27 = vunpack.i.l.bf16 %v2209_v19  ;;  %v2211_v31 = vunpack.i.h.bf16 %v2209_v19 }
 0x429   : > { %v671_v14 = vpop.xlane.xlu2 %670 }
 0x431   : > { %v509_v15 = vpop.xlane.xlu2 %508 }
 0x432   : > { %2264 = vrcp.f32 %v509_v15 }
 0x435   : > { %v674_v28 = vpop.xlane.xlu0 %673 }
 0x438   : > { %v2265_v17 = vpop.eup %2264 }
 0x439   : > { %v512_v16 = vpop.xlane.xlu2 %511  ;;  %v523_v18 = vmul.f32 %v2265_v17, %v2251_v43 }
 0x43a   : > { %2266 = vrcp.f32 %v512_v16 }
 0x43b   : > { %2074 = vmatmul.msk.f32.vlgmr.msra.gmra.mxu3 %vm270_vm0, %v523_v18  ;;  %2268 = vrcp.f32 %v671_v14 }
 0x440   : > { %v2267_v21 = vpop.eup %2266 }
 0x441   : > { %v2204_v22 = vpop.permute.xlu2 %2203  ;;  %v515_v23 = vpop.xlane.xlu1 %514  ;;  %v524_v24 = vmul.f32 %v2267_v21, %v2255_v51 }
 0x442   : > { %2270 = vrcp.f32 %v515_v23  ;;  %v2205_v25 = vunpack.i.l.bf16 %v2204_v22  ;;  %v2206_v26 = vunpack.i.h.bf16 %v2204_v22  ;;  %v2269_v29 = vpop.eup %2268  ;;  %v837_v22 = vld [vmem:[%s3275_s1 + $0x40] sm:$0xff]  ;;  %v836_v23 = vld [vmem:[%s3275_s1 + $0x38] sm:$0xff] }
 0x443   : > { %2075 = vmatmul.msk.f32.gmra.mxu3 %vm270_vm0, %v524_v24  ;;  %2272 = vrcp.f32 %v674_v28  ;;  %v685_v34 = vmul.f32 %v2269_v29, %v2682_v38  ;;  %v835_v24 = vld [vmem:[%s3275_s1 + $0x30] sm:$0xff] }
 0x444   : > { %725 = vmatpush.msrb.mxu1 %v2205_v25  ;;  %864 = vmatpush.msrb.mxu3 %v837_v22  ;;  %v834_v25 = vld [vmem:[%s3275_s1 + $0x28] sm:$0xff] }
 0x446   : > { %726 = vmatpush.msrb.mxu1 %v2206_v26  ;;  %865 = vmatpush.msrb.mxu3 %v836_v23  ;;  %v1065_v23 = vld [vmem:[%s3276_s2 + $0xa0] sm:$0xff] }
 0x448   : > { %v2271_v30 = vpop.eup %2270  ;;  %727 = vmatpush.msrb.mxu1 %v2210_v27  ;;  %866 = vmatpush.msrb.mxu3 %v835_v24 }
 0x449   : > { %v525_v32 = vmul.f32 %v2271_v30, %v2257_v56  ;;  %v677_v35 = vpop.xlane.xlu1 %676  ;;  %v2273_v36 = vpop.eup %2272 }
 0x44a   : > { %728 = vmatpush.msrb.mxu1 %v2211_v31  ;;  %2274 = vrcp.f32 %v677_v35  ;;  %v686_v39 = vmul.f32 %v2273_v36, %v2687_v47  ;;  %867 = vmatpush.msrb.mxu3 %v834_v25  ;;  %v1064_v25 = vld [vmem:[%s3276_s2 + $0x98] sm:$0xff] }
 0x44b   : > { %2076 = vmatmul.msk.f32.gmra.mxu3 %vm270_vm0, %v525_v32  ;;  %2086 = vmatmul.msk.f32.vlgmr.msrb.gmra.mxu1 %vm270_vm0, %v685_v34 }
 0x450   : > { %v2275_v40 = vpop.eup %2274 }
 0x451   : > { %v687_v41 = vmul.f32 %v2275_v40, %v2693_v58 }
 0x453   : > { %2087 = vmatmul.msk.f32.gmra.mxu1 %vm270_vm0, %v686_v39 }
 0x45b   : > { %2088 = vmatmul.msk.f32.gmra.mxu1 %vm270_vm0, %v687_v41 }
 0x477   : > { %v680_v42 = vpop.xlane.xlu0 %679 }
 0x478   : > { %2276 = vrcp.f32 %v680_v42 }
 0x47a   : > { %v518_v38 = vpop.xlane.xlu2 %517 }
 0x47b   : > { %2278 = vrcp.f32 %v518_v38 }
 0x47e   : > { %v2277_v43 = vpop.eup %2276 }
 0x47f   : > { %v688_v44 = vmul.f32 %v2277_v43, %v2261_v10 }
 0x481   : > { %v2279_v45 = vpop.eup %2278  ;;  %2089 = vmatmul.msk.f32.gmra.mxu1 %vm270_vm0, %v688_v44 }
 0x482   : > { %v526_v46 = vmul.f32 %v2279_v45, %v2263_v11 }
 0x484   : > { %2077 = vmatmul.msk.f32.gmra.mxu3 %vm270_vm0, %v526_v46 }
 0x4be   : > { %v568_v47 = vpop.f32.mrf.mxu3 }
 0x4bf   : > { %v580_v48 = vadd.f32 %v568_v47, %v2510_v1 }
 0x4c6   : > { %v571_v51 = vpop.f32.mrf.mxu3 }
 0x4c7   : > { %v581_v53 = vadd.f32 %v571_v51, %v2527_v6 }
 0x4c8   : > { %v730_v49 = vpop.f32.mrf.mxu1 }
 0x4c9   : > { %v2714_v50 = vadd.f32 %v730_v49, %v580_v48 }
 0x4cb   : > { %v746_v52 = vsel %vm270_vm0, %v2714_v50, 0.0 }
 0x4cc   : > { %747 = vadd.xlane.f32.xlu1 %v746_v52 }
 0x4ce   : > { %v574_v57 = vpop.f32.mrf.mxu3 }
 0x4cf   : > { %v582_v1 = vadd.f32 %v574_v57, %v2557_v33 }
 0x4d0   : > { %v733_v54 = vpop.f32.mrf.mxu1 }
 0x4d1   : > { %v2719_v55 = vadd.f32 %v733_v54, %v581_v53 }
 0x4d3   : > { %v749_v56 = vsel %vm270_vm0, %v2719_v55, 0.0 }
 0x4d4   : > { %750 = vadd.xlane.f32.xlu0 %v749_v56 }
 0x4d8   : > { %v736_v58 = vpop.f32.mrf.mxu1 }
 0x4d9   : > { %v2724_v59 = vadd.f32 %v736_v58, %v582_v1 }
 0x4db   : > { %v752_v60 = vsel %vm270_vm0, %v2724_v59, 0.0 }
 0x4dc   : > { %753 = vadd.xlane.f32.xlu1 %v752_v60 }
 0x4fe   : > { %v739_v62 = vpop.f32.mrf.mxu1 }
 0x507   : > { %v577_v61 = vpop.f32.mrf.mxu3 }
 0x508   : > { %v583_v6 = vadd.f32 %v577_v61, %v2564_v37 }
 0x50a   : > { %v2729_v63 = vadd.f32 %v739_v62, %v583_v6 }
 0x50c   : > { %v755_v0 = vsel %vm270_vm0, %v2729_v63, 0.0 }
 0x50d   : > { %756 = vadd.xlane.f32.xlu2 %v755_v0 }
 0x53f   : > { %v748_v2 = vpop.xlane.xlu1 %747 }
 0x540   : > { %v758_v33 = vmul.f32 %v748_v2, %v2546_v20 }
 0x542   : > { %v762_v3 = vsub.f32 %v2714_v50, %v758_v33 }
 0x544   : > { %v766_v4 = vmul.f32 %v762_v3, %v762_v3 }
 0x546   : > { %v770_v5 = vsel %vm270_vm0, %v766_v4, 0.0 }
 0x547   : > { %771 = vadd.xlane.f32.xlu0 %v770_v5  ;;  %v751_v7 = vpop.xlane.xlu0 %750 }
 0x548   : > { %v759_v8 = vmul.f32 %v751_v7, %v2546_v20 }
 0x54a   : > { %v763_v37 = vsub.f32 %v2719_v55, %v759_v8 }
 0x54c   : > { %v767_v9 = vmul.f32 %v763_v37, %v763_v37 }
 0x54e   : > { %v773_v10 = vsel %vm270_vm0, %v767_v9, 0.0 }
 0x54f   : > { %774 = vadd.xlane.f32.xlu1 %v773_v10  ;;  %v754_v11 = vpop.xlane.xlu1 %753  ;;  %v1072_v10 = vld [vmem:[%s3276_s2 + $0xd8] sm:$0xff] }
 0x550   : > { %v760_v12 = vmul.f32 %v754_v11, %v2546_v20  ;;  %1075 = vmatpush.msrb.mxu2 %v1072_v10  ;;  %v1071_v11 = vld [vmem:[%s3276_s2 + $0xd0] sm:$0xff] }
 0x552   : > { %v2741_v13 = vsub.f32 %v2724_v59, %v760_v12  ;;  %1076 = vmatpush.msrb.mxu2 %v1071_v11  ;;  %v1070_v12 = vld [vmem:[%s3276_s2 + $0xc8] sm:$0xff] }
 0x554   : > { %v768_v14 = vmul.f32 %v2741_v13, %v2741_v13  ;;  %1077 = vmatpush.msrb.mxu2 %v1070_v12 }
 0x556   : > { %v776_v15 = vsel %vm270_vm0, %v768_v14, 0.0  ;;  %v1069_v14 = vld [vmem:[%s3276_s2 + $0xc0] sm:$0xff] }
 0x557   : > { %777 = vadd.xlane.f32.xlu2 %v776_v15  ;;  %1078 = vmatpush.msrb.mxu2 %v1069_v14  ;;  %v1068_v15 = vld [vmem:[%s3276_s2 + $0xb8] sm:$0xff] }
 0x559   : > { %1079 = vmatpush.msrb.mxu2 %v1068_v15 }
 0x580   : > { %v757_v17 = vpop.xlane.xlu2 %756 }
 0x581   : > { %v761_v16 = vmul.f32 %v757_v17, %v2546_v20 }
 0x583   : > { %v2748_v18 = vsub.f32 %v2729_v63, %v761_v16 }
 0x585   : > { %v769_v19 = vmul.f32 %v2748_v18, %v2748_v18 }
 0x587   : > { %v779_v21 = vsel %vm270_vm0, %v769_v19, 0.0 }
 0x588   : > { %780 = vadd.xlane.f32.xlu0 %v779_v21  ;;  %v1066_v21 = vld [vmem:[%s3276_s2 + $0xa8] sm:$0xff] }
 0x5ba   : > { %v772_v26 = vpop.xlane.xlu0 %771 }
 0x5bb   : > { %v782_v28 = vmul.f32 %v772_v26, %v2546_v20 }
 0x5bd   : > { %v786_v29 = vadd.f32 1e-05, %v782_v28 }
 0x5bf   : > { %2280 = vrsqrt.f32 %v786_v29  ;;  %vm796_vm2 = vweird.f32 %v786_v29 }
 0x5c2   : > { %v775_v27 = vpop.xlane.xlu1 %774 }
 0x5c3   : > { %v783_v30 = vmul.f32 %v775_v27, %v2546_v20 }
 0x5c5   : > { %v2281_v31 = vpop.eup %2280  ;;  %v787_v32 = vadd.f32 1e-05, %v783_v30  ;;  %v1063_v30 = vld [vmem:[%s3276_s2 + $0x90] sm:$0xff] }
 0x5c6   : > { %v791_v34 = vmul.f32 %v2281_v31, %v786_v29  ;;  %vm797_vm1 = vweird.f32 %v2281_v31 }
 0x5c7   : > { %2282 = vrsqrt.f32 %v787_v32  ;;  %vm798_vm3 = vmor %vm796_vm2, %vm797_vm1  ;;  %vm806_vm5 = vweird.f32 %v787_v32 }
 0x5c8   : > { %v792_v35 = vmul.f32 %v2281_v31, %v791_v34  ;;  %v1062_v34 = vld [vmem:[%s3276_s2 + $0x88] sm:$0xff] }
 0x5ca   : > { %v793_v36 = vmul.f32 0.5, %v792_v35  ;;  %v778_v39 = vpop.xlane.xlu2 %777 }
 0x5cb   : > { %v784_v40 = vmul.f32 %v778_v39, %v2546_v20 }
 0x5cc   : > { %v794_v41 = vsub.f32 1.5, %v793_v36 }
 0x5cd   : > { %v2283_v42 = vpop.eup %2282  ;;  %v788_v38 = vadd.f32 1e-05, %v784_v40  ;;  %v1061_v40 = vld [vmem:[%s3276_s2 + $0x80] sm:$0xff] }
 0x5ce   : > { %v795_v43 = vmul.f32 %v2281_v31, %v794_v41  ;;  %v801_v44 = vmul.f32 %v2283_v42, %v787_v32  ;;  %vm807_vm4 = vweird.f32 %v2283_v42 }
 0x5cf   : > { %2284 = vrsqrt.f32 %v788_v38  ;;  %vm808_vm6 = vmor %vm806_vm5, %vm807_vm4  ;;  %vm816_vm8 = vweird.f32 %v788_v38 }
 0x5d0   : > { %v802_v45 = vmul.f32 %v2283_v42, %v801_v44  ;;  %v799_v46 = vsel %vm798_vm3, %v2281_v31, %v795_v43  ;;  %v1059_v44 = vld [vmem:[%s3276_s2 + $0x70] sm:$0xff] }
 0x5d1   : > { %v830_v47 = vmul.f32 %v799_v46, %v762_v3 }
 0x5d2   : > { %v803_v48 = vmul.f32 0.5, %v802_v45 }
 0x5d3   : > { %2090 = vmatmul.msk.f32.vlgmr.msrb.gmra.mxu3 %vm270_vm0, %v830_v47 }
 0x5d4   : > { %v804_v49 = vsub.f32 1.5, %v803_v48 }
 0x5d5   : > { %v2285_v51 = vpop.eup %2284 }
 0x5d6   : > { %v811_v52 = vmul.f32 %v2285_v51, %v788_v38  ;;  %v805_v53 = vmul.f32 %v2283_v42, %v804_v49  ;;  %vm817_vm7 = vweird.f32 %v2285_v51  ;;  %v1058_v49 = vld [vmem:[%s3276_s2 + $0x68] sm:$0xff] }
 0x5d7   : > { %vm818_vm9 = vmor %vm816_vm8, %vm817_vm7 }
 0x5d8   : > { %v812_v54 = vmul.f32 %v2285_v51, %v811_v52  ;;  %v809_v56 = vsel %vm808_vm6, %v2283_v42, %v805_v53  ;;  %v1060_v42 = vld [vmem:[%s3276_s2 + $0x78] sm:$0xff] }
 0x5d9   : > { %v831_v57 = vmul.f32 %v809_v56, %v763_v37  ;;  %v1057_v56 = vld [vmem:[%s3276_s2 + $0x60] sm:$0xff] }
 0x5da   : > { %v813_v1 = vmul.f32 0.5, %v812_v54 }
 0x5db   : > { %2091 = vmatmul.msk.f32.gmra.mxu3 %vm270_vm0, %v831_v57 }
 0x5dc   : > { %v814_v58 = vsub.f32 1.5, %v813_v1 }
 0x5de   : > { %v815_v60 = vmul.f32 %v2285_v51, %v814_v58 }
 0x5e0   : > { %v819_v61 = vsel %vm818_vm9, %v2285_v51, %v815_v60 }
 0x5e1   : > { %v832_v6 = vmul.f32 %v819_v61, %v2741_v13  ;;  %v2787_v13 = vld [vmem:[%s3275_s1 + $0x48] ss:$0 sm:$0xff] }
 0x5e3   : > { %2092 = vmatmul.msk.f32.gmra.mxu3 %vm270_vm0, %v832_v6 }
 0x5fb   : > { %v781_v62 = vpop.xlane.xlu0 %780 }
 0x5fc   : > { %v785_v0 = vmul.f32 %v781_v62, %v2546_v20 }
 0x5fe   : > { %v789_v2 = vadd.f32 1e-05, %v785_v0 }
 0x600   : > { %2286 = vrsqrt.f32 %v789_v2  ;;  %vm826_vm11 = vweird.f32 %v789_v2 }
 0x606   : > { %v2287_v33 = vpop.eup %2286 }
 0x607   : > { %v821_v3 = vmul.f32 %v2287_v33, %v789_v2  ;;  %vm827_vm10 = vweird.f32 %v2287_v33 }
 0x608   : > { %vm828_vm12 = vmor %vm826_vm11, %vm827_vm10 }
 0x609   : > { %v822_v4 = vmul.f32 %v2287_v33, %v821_v3 }
 0x60b   : > { %v823_v5 = vmul.f32 0.5, %v822_v4 }
 0x60d   : > { %v824_v7 = vsub.f32 1.5, %v823_v5 }
 0x60f   : > { %v825_v8 = vmul.f32 %v2287_v33, %v824_v7 }
 0x611   : > { %v829_v37 = vsel %vm828_vm12, %v2287_v33, %v825_v8 }
 0x612   : > { %v833_v9 = vmul.f32 %v829_v37, %v2748_v18  ;;  %v1067_v18 = vld [vmem:[%s3276_s2 + $0xb0] sm:$0xff] }
 0x613   : > { %1080 = vmatpush.msrb.mxu2 %v1067_v18 }
 0x614   : > { %2093 = vmatmul.msk.f32.gmra.mxu3 %vm270_vm0, %v833_v9 }
 0x615   : > { %1081 = vmatpush.msrb.mxu2 %v1066_v21 }
 0x617   : > { %1082 = vmatpush.msrb.mxu2 %v1065_v23 }
 0x619   : > { %1083 = vmatpush.msrb.mxu2 %v1064_v25 }
 0x61b   : > { %1084 = vmatpush.msrb.mxu2 %v1063_v30 }
 0x61d   : > { %1085 = vmatpush.msrb.mxu2 %v1062_v34 }
 0x61f   : > { %1086 = vmatpush.msrb.mxu2 %v1061_v40 }
 0x621   : > { %1087 = vmatpush.msrb.mxu2 %v1060_v42 }
 0x623   : > { %1088 = vmatpush.msrb.mxu2 %v1059_v44 }
 0x625   : > { %1089 = vmatpush.msrb.mxu2 %v1058_v49 }
 0x627   : > { %1090 = vmatpush.msrb.mxu2 %v1057_v56 }
 0x656   : > { %v869_v17 = vpop.f32.mrf.mxu3 }
 0x657   : > { %v2796_v16 = vadd.f32 %v2787_v13, %v869_v17 }
 0x659   : > { %v2802_v19 = vmul.f32 0.70710677, %v2796_v16 }
 0x65b   : > { %v889_v22 = vmul.f32 %v2802_v19, %v2802_v19 }
 0x65d   : > { %v2812_v24 = vmin.f32 %v889_v22, 16.0 }
 0x65e   : > { %v872_v26 = vpop.f32.mrf.mxu3 }
 0x65f   : > { %v891_v28 = vmul.f32 2.1237322e-06, %v2812_v24  ;;  %v902_v29 = vmul.f32 3.8918573e-05, %v2812_v24  ;;  %v2820_v27 = vadd.f32 %v2787_v13, %v872_v26 }
 0x661   : > { %v892_v31 = vadd.f32 0.00028619796, %v891_v28  ;;  %v903_v32 = vadd.f32 0.001143296, %v902_v29  ;;  %v2829_v35 = vmul.f32 0.70710677, %v2820_v27 }
 0x663   : > { %v893_v36 = vmul.f32 %v892_v31, %v2812_v24  ;;  %v904_v39 = vmul.f32 %v903_v32, %v2812_v24  ;;  %v929_v41 = vmul.f32 %v2829_v35, %v2829_v35 }
 0x665   : > { %v894_v38 = vadd.f32 0.0036580483, %v893_v36  ;;  %v905_v43 = vadd.f32 0.014752088, %v904_v39  ;;  %v2844_v45 = vmin.f32 %v929_v41, 16.0 }
 0x666   : > { %v875_v46 = vpop.f32.mrf.mxu3 }
 0x667   : > { %v906_v47 = vmul.f32 %v905_v43, %v2812_v24  ;;  %v2848_v48 = vadd.f32 %v2787_v13, %v875_v46  ;;  %v931_v51 = vmul.f32 2.1237322e-06, %v2844_v45  ;;  %v942_v52 = vmul.f32 3.8918573e-05, %v2844_v45 }
 0x668   : > { %v895_v53 = vmul.f32 %v894_v38, %v2812_v24 }
 0x669   : > { %v907_v54 = vadd.f32 0.112945676, %v906_v47  ;;  %v932_v57 = vadd.f32 0.00028619796, %v931_v51  ;;  %v2860_v1 = vmul.f32 0.70710677, %v2848_v48 }
 0x66a   : > { %v943_v58 = vadd.f32 0.001143296, %v942_v52  ;;  %v896_v0 = vadd.f32 0.05243302, %v895_v53 }
 0x66b   : > { %v908_v60 = vmul.f32 %v907_v54, %v2812_v24  ;;  %v933_v61 = vmul.f32 %v932_v57, %v2844_v45  ;;  %v969_v6 = vmul.f32 %v2860_v1, %v2860_v1 }
 0x66c   : > { %v944_v62 = vmul.f32 %v943_v58, %v2844_v45  ;;  %v897_v37 = vmul.f32 %v896_v0, %v2812_v24  ;;  %v881_v0 = vmul.f32 0.5, %v2796_v16 }
 0x66d   : > { %v909_v2 = vadd.f32 0.4994258, %v908_v60  ;;  %v2867_v33 = vmin.f32 %v969_v6, 16.0  ;;  %v934_v5 = vadd.f32 0.0036580483, %v933_v61 }
 0x66e   : > { %v945_v3 = vadd.f32 0.014752088, %v944_v62  ;;  %v898_v17 = vadd.f32 0.18741608, %v897_v37 }
 0x66f   : > { %v910_v4 = vmul.f32 %v909_v2, %v2812_v24  ;;  %v971_v7 = vmul.f32 2.1237322e-06, %v2867_v33  ;;  %v982_v10 = vmul.f32 3.8918573e-05, %v2867_v33  ;;  %v935_v12 = vmul.f32 %v934_v5, %v2844_v45 }
 0x670   : > { %v946_v8 = vmul.f32 %v945_v3, %v2844_v45  ;;  %v899_v28 = vmul.f32 %v898_v17, %v2812_v24 }
 0x671   : > { %v911_v9 = vadd.f32 1.0, %v910_v4  ;;  %v972_v14 = vadd.f32 0.00028619796, %v971_v7  ;;  %v983_v18 = vadd.f32 0.001143296, %v982_v10 }
 0x672   : > { %v947_v11 = vadd.f32 0.112945676, %v946_v8  ;;  %v936_v21 = vadd.f32 0.05243302, %v935_v12  ;;  %v900_v41 = vadd.f32 1.1283791, %v899_v28 }
 0x673   : > { %2288 = vrcp.f32 %v911_v9  ;;  %v973_v22 = vmul.f32 %v972_v14, %v2867_v33  ;;  %v984_v25 = vmul.f32 %v983_v18, %v2867_v33  ;;  %v923_v42 = vand.u32 2147483648, %v911_v9 }
 0x674   : > { %v948_v15 = vmul.f32 %v947_v11, %v2844_v45  ;;  %v937_v32 = vmul.f32 %v936_v21, %v2844_v45  ;;  %v921_v43 = vand.u32 2147483647, %v911_v9  ;;  %vm917_vm14 = vweird.f32 %v911_v9 }
 0x675   : > { %v985_v30 = vadd.f32 0.014752088, %v984_v25  ;;  %v974_v34 = vadd.f32 0.0036580483, %v973_v22  ;;  %v924_v51 = vor.u32 1.1754944e-38, %v923_v42  ;;  %v901_v52 = vmul.f32 %v900_v41, %v2802_v19 }
 0x676   : > { %v949_v23 = vadd.f32 0.4994258, %v948_v15  ;;  %v938_v46 = vadd.f32 0.18741608, %v937_v32  ;;  %vm922_vm2 = vcmp.eq.f32.partialorder %v921_v43, 8.507059e+37  ;;  %v882_v25 = vmul.f32 0.5, %v2820_v27 }
 0x677   : > { %v986_v39 = vmul.f32 %v985_v30, %v2867_v33  ;;  %v975_v24 = vmul.f32 %v974_v34, %v2867_v33 }
 0x678   : > { %v950_v29 = vmul.f32 %v949_v23, %v2844_v45  ;;  %v939_v58 = vmul.f32 %v938_v46, %v2844_v45  ;;  %v883_v46 = vmul.f32 0.5, %v2848_v48 }
 0x679   : > { %v2289_v26 = vpop.eup %2288  ;;  %v987_v44 = vadd.f32 0.112945676, %v986_v39  ;;  %v976_v60 = vadd.f32 0.05243302, %v975_v24 }
 0x67a   : > { %v913_v31 = vmul.f32 %v2289_v26, %v911_v9  ;;  %v951_v36 = vadd.f32 1.0, %v950_v29  ;;  %vm918_vm13 = vweird.f32 %v2289_v26  ;;  %v940_v4 = vadd.f32 1.1283791, %v939_v58 }
 0x67b   : > { %v988_v49 = vmul.f32 %v987_v44, %v2867_v33  ;;  %vm919_vm1 = vmor %vm917_vm14, %vm918_vm13  ;;  %v977_v5 = vmul.f32 %v976_v60, %v2867_v33 }
 0x67c   : > { %v914_v40 = vsub.f32 1.0, %v913_v31  ;;  %2290 = vrcp.f32 %v951_v36  ;;  %v963_v19 = vand.u32 2147483648, %v951_v36  ;;  %v961_v9 = vand.u32 2147483647, %v951_v36 }
 0x67d   : > { %v989_v54 = vadd.f32 0.4994258, %v988_v49  ;;  %vm957_vm4 = vweird.f32 %v951_v36  ;;  %v978_v11 = vadd.f32 0.18741608, %v977_v5  ;;  %v941_v16 = vmul.f32 %v940_v4, %v2829_v35 }
 0x67e   : > { %v915_v38 = vmul.f32 %v2289_v26, %v914_v40  ;;  %v964_v12 = vor.u32 1.1754944e-38, %v963_v19  ;;  %vm962_vm6 = vcmp.eq.f32.partialorder %v961_v9, 8.507059e+37 }
 0x67f   : > { %v990_v62 = vmul.f32 %v989_v54, %v2867_v33  ;;  %v979_v21 = vmul.f32 %v978_v11, %v2867_v33 }
 0x680   : > { %v916_v47 = vadd.f32 %v2289_v26, %v915_v38 }
 0x681   : > { %v991_v7 = vadd.f32 1.0, %v990_v62  ;;  %v980_v29 = vadd.f32 1.1283791, %v979_v21 }
 0x682   : > { %v920_v53 = vsel %vm919_vm1, %v2289_v26, %v916_v47  ;;  %v2291_v56 = vpop.eup %2290 }
 0x683   : > { %v925_v57 = vsel %vm922_vm2, %v924_v51, %v920_v53  ;;  %v953_v6 = vmul.f32 %v2291_v56, %v951_v36  ;;  %vm958_vm3 = vweird.f32 %v2291_v56  ;;  %2292 = vrcp.f32 %v991_v7 }
 0x684   : > { %v926_v61 = vmul.f32 %v925_v57, %v901_v52  ;;  %vm959_vm5 = vmor %vm957_vm4, %vm958_vm3  ;;  %v1003_v30 = vand.u32 2147483648, %v991_v7  ;;  %v1001_v35 = vand.u32 2147483647, %v991_v7  ;;  %vm997_vm8 = vweird.f32 %v991_v7 }
 0x685   : > { %v954_v3 = vsub.f32 1.0, %v953_v6  ;;  %v981_v33 = vmul.f32 %v980_v29, %v2860_v1 }
 0x686   : > { %v2094_v2 = vclamps-f32 %v926_v61, 1.0  ;;  %v1004_v39 = vor.u32 1.1754944e-38, %v1003_v30  ;;  %vm1002_vm10 = vcmp.eq.f32.partialorder %v1001_v35, 8.507059e+37 }
 0x687   : > { %v955_v37 = vmul.f32 %v2291_v56, %v954_v3 }
 0x688   : > { %v1049_v8 = vadd.f32 1.0, %v2094_v2 }
 0x689   : > { %v956_v10 = vadd.f32 %v2291_v56, %v955_v37  ;;  %v2293_v18 = vpop.eup %2292 }
 0x68a   : > { %v1053_v45 = vmul.f32 %v1049_v8, %v881_v0  ;;  %v993_v23 = vmul.f32 %v2293_v18, %v991_v7  ;;  %vm998_vm7 = vweird.f32 %v2293_v18 }
 0x68b   : > { %v960_v14 = vsel %vm959_vm5, %v2291_v56, %v956_v10  ;;  %vm999_vm9 = vmor %vm997_vm8, %vm998_vm7 }
 0x68c   : > { %1091 = vmatmul.f32.vlgmr.msrb.gmra.mxu2 %v1053_v45  ;;  %v965_v15 = vsel %vm962_vm6, %v964_v12, %v960_v14  ;;  %v994_v28 = vsub.f32 1.0, %v993_v23 }
 0x68d   : > { %v966_v17 = vmul.f32 %v965_v15, %v941_v16 }
 0x68e   : > { %v995_v32 = vmul.f32 %v2293_v18, %v994_v28 }
 0x68f   : > { %v2095_v22 = vclamps-f32 %v966_v17, 1.0 }
 0x690   : > { %v996_v34 = vadd.f32 %v2293_v18, %v995_v32 }
 0x691   : > { %v1050_v26 = vadd.f32 1.0, %v2095_v22 }
 0x692   : > { %v1000_v41 = vsel %vm999_vm9, %v2293_v18, %v996_v34 }
 0x693   : > { %v1054_v31 = vmul.f32 %v1050_v26, %v882_v25  ;;  %v1005_v27 = vsel %vm1002_vm10, %v1004_v39, %v1000_v41  ;;  %v2234_v25 = vld [vmem:[%s3276_s2 + $0x160] ss:$0 sm:$0xff] }
 0x694   : > { %v1006_v38 = vmul.f32 %v1005_v27, %v981_v33 }
 0x695   : > { %1094 = vmatmul.f32.gmra.mxu2 %v1054_v31 }
 0x696   : > { %v2096_v44 = vclamps-f32 %v1006_v38, 1.0 }
 0x697   : > { %v878_v36 = vpop.f32.mrf.mxu3 }
 0x698   : > { %v879_v40 = vadd.f32 %v2787_v13, %v878_v36  ;;  %v1051_v47 = vadd.f32 1.0, %v2096_v44 }
 0x69a   : > { %v888_v42 = vmul.f32 0.70710677, %v879_v40  ;;  %v1055_v51 = vmul.f32 %v1051_v47, %v883_v46  ;;  %v884_v21 = vmul.f32 0.5, %v879_v40 }
 0x69c   : > { %v1009_v43 = vmul.f32 %v888_v42, %v888_v42 }
 0x69d   : > { %1097 = vmatmul.f32.gmra.mxu2 %v1055_v51 }
 0x69e   : > { %v1010_v24 = vmin.f32 %v1009_v43, 16.0 }
 0x6a0   : > { %v1011_v49 = vmul.f32 2.1237322e-06, %v1010_v24  ;;  %v1022_v52 = vmul.f32 3.8918573e-05, %v1010_v24 }
 0x6a2   : > { %v1012_v53 = vadd.f32 0.00028619796, %v1011_v49  ;;  %v1023_v54 = vadd.f32 0.001143296, %v1022_v52 }
 0x6a4   : > { %v1013_v1 = vmul.f32 %v1012_v53, %v1010_v24  ;;  %v1024_v56 = vmul.f32 %v1023_v54, %v1010_v24 }
 0x6a6   : > { %v1025_v13 = vadd.f32 0.014752088, %v1024_v56  ;;  %v1014_v57 = vadd.f32 0.0036580483, %v1013_v1 }
 0x6a8   : > { %v1026_v58 = vmul.f32 %v1025_v13, %v1010_v24  ;;  %v1015_v61 = vmul.f32 %v1014_v57, %v1010_v24 }
 0x6aa   : > { %v1027_v60 = vadd.f32 0.112945676, %v1026_v58  ;;  %v1016_v0 = vadd.f32 0.05243302, %v1015_v61  ;;  %v2101_v61 = vld [vmem:[%s3275_s1 + $0x68] sm:$0xff] }
 0x6ab   : > { %1227 = vmatpush.msra.mxu0 %v2101_v61 }
 0x6ac   : > { %v1028_v6 = vmul.f32 %v1027_v60, %v1010_v24  ;;  %v1017_v3 = vmul.f32 %v1016_v0, %v1010_v24  ;;  %v2098_v0 = vld [vmem:[%s3275_s1 + $0x50] sm:$0xff] }
 0x6ae   : > { %v1029_v62 = vadd.f32 0.4994258, %v1028_v6  ;;  %v1018_v4 = vadd.f32 0.18741608, %v1017_v3  ;;  %v2100_v6 = vld [vmem:[%s3275_s1 + $0x60] sm:$0xff] }
 0x6af   : > { %1228 = vmatpush.msra.mxu0 %v2100_v6 }
 0x6b0   : > { %v1030_v2 = vmul.f32 %v1029_v62, %v1010_v24  ;;  %v1019_v19 = vmul.f32 %v1018_v4, %v1010_v24  ;;  %v2099_v62 = vld [vmem:[%s3275_s1 + $0x58] sm:$0xff] }
 0x6b1   : > { %1229 = vmatpush.msra.mxu0 %v2099_v62 }
 0x6b2   : > { %v1031_v48 = vadd.f32 1.0, %v1030_v2  ;;  %v1020_v9 = vadd.f32 1.1283791, %v1019_v19 }
 0x6b3   : > { %1230 = vmatpush.msra.mxu0 %v2098_v0 }
 0x6b4   : > { %2294 = vrcp.f32 %v1031_v48  ;;  %v1043_v37 = vand.u32 2147483648, %v1031_v48  ;;  %v1041_v10 = vand.u32 2147483647, %v1031_v48  ;;  %vm1037_vm12 = vweird.f32 %v1031_v48 }
 0x6b5   : > { %v1021_v16 = vmul.f32 %v1020_v9, %v888_v42 }
 0x6b6   : > { %v1044_v12 = vor.u32 1.1754944e-38, %v1043_v37  ;;  %vm1042_vm14 = vcmp.eq.f32.partialorder %v1041_v10, 8.507059e+37 }
 0x6ba   : > { %v2295_v5 = vpop.eup %2294 }
 0x6bb   : > { %v1033_v7 = vmul.f32 %v2295_v5, %v1031_v48  ;;  %vm1038_vm11 = vweird.f32 %v2295_v5 }
 0x6bc   : > { %vm1039_vm13 = vmor %vm1037_vm12, %vm1038_vm11 }
 0x6bd   : > { %v1034_v8 = vsub.f32 1.0, %v1033_v7 }
 0x6bf   : > { %v1035_v45 = vmul.f32 %v2295_v5, %v1034_v8 }
 0x6c1   : > { %v1036_v11 = vadd.f32 %v2295_v5, %v1035_v45 }
 0x6c3   : > { %v1040_v14 = vsel %vm1039_vm13, %v2295_v5, %v1036_v11 }
 0x6c4   : > { %v1045_v15 = vsel %vm1042_vm14, %v1044_v12, %v1040_v14 }
 0x6c5   : > { %v1046_v17 = vmul.f32 %v1045_v15, %v1021_v16 }
 0x6c7   : > { %v2097_v18 = vclamps-f32 %v1046_v17, 1.0 }
 0x6c9   : > { %v1052_v22 = vadd.f32 1.0, %v2097_v18 }
 0x6cb   : > { %v1056_v23 = vmul.f32 %v1052_v22, %v884_v21 }
 0x6cd   : > { %1100 = vmatmul.f32.gmra.mxu2 %v1056_v23 }
 0x70f   : > { %v1092_v26 = vpop.f32.mrf.mxu2 }
 0x710   : > { %v1093_v28 = vadd.f32 %v2234_v25, %v1092_v26 }
 0x712   : > { %v2899_v29 = vadd.f32 %v1093_v28, %v2714_v50 }
 0x714   : > { %v1108_v30 = vsel %vm270_vm0, %v2899_v29, 0.0 }
 0x715   : > { %1109 = vadd.xlane.f32.xlu1 %v1108_v30 }
 0x718   : > { %v1095_v31 = vpop.f32.mrf.mxu2 }
 0x719   : > { %v1096_v32 = vadd.f32 %v2234_v25, %v1095_v31 }
 0x71b   : > { %v2904_v35 = vadd.f32 %v1096_v32, %v2719_v55 }
 0x71d   : > { %v1111_v34 = vsel %vm270_vm0, %v2904_v35, 0.0 }
 0x71e   : > { %1112 = vadd.xlane.f32.xlu2 %v1111_v34 }
 0x720   : > { %v1098_v36 = vpop.f32.mrf.mxu2 }
 0x721   : > { %v1099_v39 = vadd.f32 %v2234_v25, %v1098_v36 }
 0x723   : > { %v2909_v33 = vadd.f32 %v1099_v39, %v2724_v59 }
 0x725   : > { %v1114_v50 = vsel %vm270_vm0, %v2909_v33, 0.0 }
 0x726   : > { %1115 = vadd.xlane.f32.xlu0 %v1114_v50 }
 0x750   : > { %v1101_v40 = vpop.f32.mrf.mxu2 }
 0x751   : > { %v1102_v41 = vadd.f32 %v2234_v25, %v1101_v40 }
 0x753   : > { %v2914_v27 = vadd.f32 %v1102_v41, %v2729_v63 }
 0x755   : > { %v1117_v55 = vsel %vm270_vm0, %v2914_v27, 0.0 }
 0x756   : > { %1118 = vadd.xlane.f32.xlu1 %v1117_v55 }
 0x788   : > { %v1110_v42 = vpop.xlane.xlu1 %1109 }
 0x789   : > { %v1120_v38 = vmul.f32 %v1110_v42, %v2546_v20 }
 0x78b   : > { %v1124_v43 = vsub.f32 %v2899_v29, %v1120_v38 }
 0x78d   : > { %v1128_v59 = vmul.f32 %v1124_v43, %v1124_v43 }
 0x78f   : > { %v1132_v44 = vsel %vm270_vm0, %v1128_v59, 0.0 }
 0x790   : > { %1133 = vadd.xlane.f32.xlu2 %v1132_v44 }
 0x791   : > { %v1113_v46 = vpop.xlane.xlu2 %1112 }
 0x792   : > { %v1121_v24 = vmul.f32 %v1113_v46, %v2546_v20 }
 0x794   : > { %v1125_v47 = vsub.f32 %v2904_v35, %v1121_v24 }
 0x796   : > { %v1129_v63 = vmul.f32 %v1125_v47, %v1125_v47 }
 0x798   : > { %v1135_v49 = vsel %vm270_vm0, %v1129_v63, 0.0 }
 0x799   : > { %1136 = vadd.xlane.f32.xlu0 %v1135_v49  ;;  %v1116_v51 = vpop.xlane.xlu0 %1115 }
 0x79a   : > { %v1122_v52 = vmul.f32 %v1116_v51, %v2546_v20 }
 0x79c   : > { %v2926_v53 = vsub.f32 %v2909_v33, %v1122_v52  ;;  %v2235_v52 = vld [vmem:[%s3275_s1 + $0x70] ss:$0 sm:$0xff] }
 0x79e   : > { %v1130_v54 = vmul.f32 %v2926_v53, %v2926_v53 }
 0x7a0   : > { %v1138_v1 = vsel %vm270_vm0, %v1130_v54, 0.0 }
 0x7a1   : > { %1139 = vadd.xlane.f32.xlu1 %v1138_v1 }
 0x7c9   : > { %v1119_v56 = vpop.xlane.xlu1 %1118 }
 0x7ca   : > { %v1123_v13 = vmul.f32 %v1119_v56, %v2546_v20 }
 0x7cc   : > { %v2933_v57 = vsub.f32 %v2914_v27, %v1123_v13 }
 0x7ce   : > { %v1131_v58 = vmul.f32 %v2933_v57, %v2933_v57 }
 0x7d0   : > { %v1141_v60 = vsel %vm270_vm0, %v1131_v58, 0.0 }
 0x7d1   : > { %1142 = vadd.xlane.f32.xlu2 %v1141_v60 }
 0x803   : > { %v1134_v2 = vpop.xlane.xlu2 %1133 }
 0x804   : > { %v1144_v48 = vmul.f32 %v1134_v2, %v2546_v20 }
 0x806   : > { %v1148_v3 = vadd.f32 1e-05, %v1144_v48 }
 0x808   : > { %2296 = vrsqrt.f32 %v1148_v3  ;;  %vm1158_vm2 = vweird.f32 %v1148_v3 }
 0x80c   : > { %v1137_v4 = vpop.xlane.xlu0 %1136 }
 0x80d   : > { %v1145_v19 = vmul.f32 %v1137_v4, %v2546_v20 }
 0x80e   : > { %v2297_v5 = vpop.eup %2296 }
 0x80f   : > { %v1153_v7 = vmul.f32 %v2297_v5, %v1148_v3  ;;  %v1149_v8 = vadd.f32 1e-05, %v1145_v19  ;;  %vm1159_vm1 = vweird.f32 %v2297_v5 }
 0x810   : > { %vm1160_vm3 = vmor %vm1158_vm2, %vm1159_vm1 }
 0x811   : > { %v1154_v37 = vmul.f32 %v2297_v5, %v1153_v7  ;;  %2298 = vrsqrt.f32 %v1149_v8  ;;  %vm1168_vm5 = vweird.f32 %v1149_v8 }
 0x813   : > { %v1155_v9 = vmul.f32 0.5, %v1154_v37 }
 0x814   : > { %v1140_v14 = vpop.xlane.xlu1 %1139 }
 0x815   : > { %v1156_v45 = vsub.f32 1.5, %v1155_v9  ;;  %v1146_v17 = vmul.f32 %v1140_v14, %v2546_v20  ;;  %v1253_v14 = vld [vmem:[%s3277_s3 + $0x8] sm:$0xff] }
 0x817   : > { %v1157_v10 = vmul.f32 %v2297_v5, %v1156_v45  ;;  %v2299_v11 = vpop.eup %2298  ;;  %v1150_v21 = vadd.f32 1e-05, %v1146_v17 }
 0x818   : > { %v1163_v16 = vmul.f32 %v2299_v11, %v1149_v8  ;;  %vm1169_vm4 = vweird.f32 %v2299_v11  ;;  %v1252_v8 = vld [vmem:[%s3277_s3] sm:$0xff] }
 0x819   : > { %v1161_v12 = vsel %vm1160_vm3, %v2297_v5, %v1157_v10  ;;  %2300 = vrsqrt.f32 %v1150_v21  ;;  %vm1170_vm6 = vmor %vm1168_vm5, %vm1169_vm4  ;;  %vm1178_vm8 = vweird.f32 %v1150_v21 }
 0x81a   : > { %v1192_v15 = vmul.f32 %v1161_v12, %v1124_v43  ;;  %v1164_v18 = vmul.f32 %v2299_v11, %v1163_v16 }
 0x81c   : > { %2103 = vmatmul.msk.f32.vlgmr.msra.gmra.mxu0 %vm270_vm0, %v1192_v15  ;;  %v1165_v22 = vmul.f32 0.5, %v1164_v18 }
 0x81e   : > { %v1166_v23 = vsub.f32 1.5, %v1165_v22 }
 0x81f   : > { %v2301_v28 = vpop.eup %2300 }
 0x820   : > { %v1167_v25 = vmul.f32 %v2299_v11, %v1166_v23  ;;  %v1173_v31 = vmul.f32 %v2301_v28, %v1150_v21  ;;  %vm1179_vm7 = vweird.f32 %v2301_v28 }
 0x821   : > { %vm1180_vm9 = vmor %vm1178_vm8, %vm1179_vm7 }
 0x822   : > { %v1171_v26 = vsel %vm1170_vm6, %v2299_v11, %v1167_v25  ;;  %v1174_v32 = vmul.f32 %v2301_v28, %v1173_v31 }
 0x823   : > { %v1193_v30 = vmul.f32 %v1171_v26, %v1125_v47 }
 0x824   : > { %v1175_v34 = vmul.f32 0.5, %v1174_v32 }
 0x825   : > { %2104 = vmatmul.msk.f32.gmra.mxu0 %vm270_vm0, %v1193_v30 }
 0x826   : > { %v1176_v36 = vsub.f32 1.5, %v1175_v34 }
 0x828   : > { %v1177_v39 = vmul.f32 %v2301_v28, %v1176_v36 }
 0x82a   : > { %v1181_v50 = vsel %vm1180_vm9, %v2301_v28, %v1177_v39 }
 0x82b   : > { %v1194_v40 = vmul.f32 %v1181_v50, %v2926_v53 }
 0x82d   : > { %2105 = vmatmul.msk.f32.gmra.mxu0 %vm270_vm0, %v1194_v40 }
 0x844   : > { %v1143_v41 = vpop.xlane.xlu2 %1142 }
 0x845   : > { %v1147_v55 = vmul.f32 %v1143_v41, %v2546_v20 }
 0x847   : > { %v1151_v42 = vadd.f32 1e-05, %v1147_v55 }
 0x849   : > { %2302 = vrsqrt.f32 %v1151_v42  ;;  %vm1188_vm11 = vweird.f32 %v1151_v42 }
 0x84f   : > { %v2303_v38 = vpop.eup %2302 }
 0x850   : > { %v1183_v43 = vmul.f32 %v2303_v38, %v1151_v42  ;;  %vm1189_vm10 = vweird.f32 %v2303_v38 }
 0x851   : > { %vm1190_vm12 = vmor %vm1188_vm11, %vm1189_vm10 }
 0x852   : > { %v1184_v59 = vmul.f32 %v2303_v38, %v1183_v43 }
 0x854   : > { %v1185_v44 = vmul.f32 0.5, %v1184_v59 }
 0x856   : > { %v1186_v46 = vsub.f32 1.5, %v1185_v44 }
 0x858   : > { %v1187_v24 = vmul.f32 %v2303_v38, %v1186_v46  ;;  %v1254_v46 = vld [vmem:[%s3277_s3 + $0x10] sm:$0xff] }
 0x85a   : > { %v1191_v47 = vsel %vm1190_vm12, %v2303_v38, %v1187_v24 }
 0x85b   : > { %v1195_v63 = vmul.f32 %v1191_v47, %v2933_v57 }
 0x85d   : > { %2106 = vmatmul.msk.f32.gmra.mxu0 %vm270_vm0, %v1195_v63 }
 0x899   : > { %v1232_v49 = vpop.f32.mrf.mxu0 }
 0x89a   : > { %v1233_v1 = vadd.f32 %v2235_v52, %v1232_v49 }
 0x8a2   : > { %v1235_v51 = vpop.f32.mrf.mxu0 }
 0x8a3   : > { %v1236_v57 = vadd.f32 %v2235_v52, %v1235_v51 }
 0x8a5   : > { %v2227_v16 = vpack.i.bf16 %v1233_v1, %v1236_v57 }
 0x8aa   : > { %v1238_v53 = vpop.f32.mrf.mxu0 }
 0x8ab   : > { %v1239_v54 = vadd.f32 %v2235_v52, %v1238_v53 }
 0x8ad   : > { %1264 = vrot.lane.b32.xlu2 %v1239_v54, %s2421_s13 }
 0x8b5   : > { %1260 = vrot.lane.b32.xlu2 %v1233_v1, %s2421_s13 }
 0x8da   : > { %v1241_v56 = vpop.f32.mrf.mxu0 }
 0x8db   : > { %v2965_v13 = vadd.f32 %v2235_v52, %v1241_v56 }
 0x8dd   : > { %1428 = vrot.lane.b32.xlu1 %v2965_v13, %s2422_s14  ;;  %1266 = vrot.lane.b32.xlu0 %v2965_v13, %s2421_s13  ;;  %v2222_v58 = vpack.i.bf16 %v1239_v54, %v2965_v13 }
 0x8e5   : > { %1262 = vrot.lane.b32.xlu1 %v1236_v57, %s2421_s13  ;;  %1426 = vrot.lane.b32.xlu0 %v1239_v54, %s2422_s14 }
 0x8ed   : > { %1422 = vrot.lane.b32.xlu1 %v1233_v1, %s2422_s14  ;;  %1424 = vrot.lane.b32.xlu0 %v1236_v57, %s2422_s14  ;;  %s1995_s14 = scalar_lea.hbm %s3279_s5, %s2477_s22 }
 0x8f5   : > { %1414 = vrot.lane.b32.xlu0 %v1233_v1, %s2423_s11 }
 0x8fd   : > { %2223 = vrot.lane.b32.xlu0 %v2222_v58, %s2425_s8 }
 0x907   : > { %v1265_v6 = vpop.permute.xlu2 %1264 }
 0x90f   : > { %v1261_v2 = vpop.permute.xlu2 %1260 }
 0x94f   : > { %v1429_v60 = vpop.permute.xlu1 %1428  ;;  %v1267_v61 = vpop.permute.xlu0 %1266 }
 0x950   : > { %2107 = vmatpush.xpose.msk.msra.mxu1 %vm437_vm15, %v1267_v61  ;;  %2119 = vmatpush.xpose.msk.msra.mxu2 %vm437_vm15, %v1429_v60 }
 0x954   : > { %2108 = vmatpush.xpose.msk.msra.mxu1 %vm437_vm15, %v1265_v6 }
 0x957   : > { %v1263_v62 = vpop.permute.xlu1 %1262  ;;  %v1427_v0 = vpop.permute.xlu0 %1426 }
 0x958   : > { %2109 = vmatpush.xpose.msk.msra.mxu1 %vm437_vm15, %v1263_v62  ;;  %2120 = vmatpush.xpose.msk.msra.mxu2 %vm437_vm15, %v1427_v0 }
 0x95c   : > { %2110 = vmatpush.xpose.msk.msra.mxu1 %vm437_vm15, %v1261_v2 }
 0x95f   : > { %v1425_v48 = vpop.permute.xlu0 %1424  ;;  %2111 = vmatmul.msk.f32.vlgmr.msra.gmra.mxu1 %vm437_vm15, %v1233_v1  ;;  %v1423_v3 = vpop.permute.xlu1 %1422 }
 0x960   : > { %2121 = vmatpush.xpose.msk.msra.mxu2 %vm437_vm15, %v1425_v48 }
 0x964   : > { %2122 = vmatpush.xpose.msk.msra.mxu2 %vm437_vm15, %v1423_v3 }
 0x967   : > { %v1415_v4 = vpop.permute.xlu0 %1414  ;;  %2112 = vmatmul.msk.f32.gmra.mxu1 %vm437_vm15, %v1236_v57 }
 0x968   : > { %2123 = vmatmul.msk.f32.vlgmr.msra.gmra.mxu2 %vm437_vm15, %v1415_v4 }
 0x96f   : > { %v2224_v5 = vpop.permute.xlu0 %2223  ;;  %2113 = vmatmul.msk.f32.gmra.mxu1 %vm437_vm15, %v1239_v54 }
 0x970   : > { %v2225_v19 = vunpack.i.l.bf16 %v2224_v5  ;;  %v2226_v7 = vunpack.i.h.bf16 %v2224_v5 }
 0x972   : > { %1555 = vmatpush.msrb.mxu0 %v2225_v19 }
 0x974   : > { %1556 = vmatpush.msrb.mxu0 %v2226_v7 }
 0x977   : > { %2114 = vmatmul.msk.f32.gmra.mxu1 %vm437_vm15, %v2965_v13 }
 0x9dc   : > { %v1301_v37 = vpop.f32.mrf.mxu1 }
 0x9dd   : > { %v1302_v9 = vadd.f32 %v1301_v37, %v1252_v8  ;;  %v1255_v37 = vld [vmem:[%s3277_s3 + $0x18] sm:$0xff] }
 0x9df   : > { %v1313_v45 = vsel %vm270_vm0, %v1302_v9, -inf }
 0x9e0   : > { %1314 = vmax.xlane.f32.xlu2 %v1313_v45 }
 0x9e4   : > { %v1304_v15 = vpop.f32.mrf.mxu1 }
 0x9e5   : > { %v1305_v17 = vadd.f32 %v1304_v15, %v1253_v14 }
 0x9e7   : > { %v1316_v18 = vsel %vm270_vm0, %v1305_v17, -inf }
 0x9eb   : > { %v1463_v10 = vpop.f32.mrf.mxu2 }
 0x9ec   : > { %v1464_v11 = vadd.f32 %v1463_v10, %v1252_v8  ;;  %v1307_v24 = vpop.f32.mrf.mxu1 }
 0x9ed   : > { %v1308_v47 = vadd.f32 %v1307_v24, %v1254_v46 }
 0x9ee   : > { %v1475_v12 = vsel %vm270_vm0, %v1464_v11, -inf }
 0x9ef   : > { %1476 = vmax.xlane.f32.xlu1 %v1475_v12  ;;  %v1319_v63 = vsel %vm270_vm0, %v1308_v47, -inf }
 0x9f8   : > { %2213 = vrot.lane.b32.xlu2 %v2222_v58, %s2424_s7 }
 0xa00   : > { %2228 = vrot.lane.b32.xlu2 %v2227_v16, %s2425_s8  ;;  %s1987_s8 = scalar_lea.sflag [#allocation4], %s216_s26 }
 0xa08   : > { %2218 = vrot.lane.b32.xlu1 %v2227_v16, %s2424_s7  ;;  %1418 = vrot.lane.b32.xlu2 %v1239_v54, %s2423_s11  ;;  %s1999_s7 = sshll.u32 %s1995_s14, 4  ;;  %s2000_s7 = int_to_ptr.hbm [resolvable:$true] %s1999_s7 }
 0xa10   : > { %1416 = vrot.lane.b32.xlu1 %v1236_v57, %s2423_s11 }
 0xa3a   : > { %1317 = vmax.xlane.f32.xlu1 %v1316_v18 }
 0xa53   : > { %v1315_v21 = vpop.xlane.xlu2 %1314 }
 0xa54   : > { %v1325_v22 = vsub.f32 %v1302_v9, %v1315_v21  ;;  %v1310_v9 = vpop.f32.mrf.mxu1 }
 0xa55   : > { %v1311_v45 = vadd.f32 %v1310_v9, %v1255_v37 }
 0xa56   : > { %v1329_v23 = vmul.f32 1.442695, %v1325_v22 }
 0xa57   : > { %v1322_v12 = vsel %vm270_vm0, %v1311_v45, -inf }
 0xa58   : > { %2304 = vpow2.f32 %v1329_v23 }
 0xa5b   : > { %v2214_v25 = vpop.permute.xlu2 %2213 }
 0xa5c   : > { %v2215_v26 = vunpack.i.l.bf16 %v2214_v25  ;;  %v2216_v30 = vunpack.i.h.bf16 %v2214_v25 }
 0xa5e   : > { %v2305_v28 = vpop.eup %2304  ;;  %1393 = vmatpush.msra.mxu3 %v2215_v26 }
 0xa5f   : > { %v1337_v31 = vsel %vm270_vm0, %v2305_v28, 0.0 }
 0xa60   : > { %1338 = vadd.xlane.f32.xlu0 %v1337_v31  ;;  %1394 = vmatpush.msra.mxu3 %v2216_v30 }
 0xa62   : > { %v1477_v32 = vpop.xlane.xlu1 %1476 }
 0xa63   : > { %v1487_v34 = vsub.f32 %v1464_v11, %v1477_v32  ;;  %v2229_v36 = vpop.permute.xlu2 %2228 }
 0xa64   : > { %v2230_v39 = vunpack.i.l.bf16 %v2229_v36  ;;  %v2231_v40 = vunpack.i.h.bf16 %v2229_v36 }
 0xa65   : > { %v1491_v50 = vmul.f32 1.442695, %v1487_v34 }
 0xa66   : > { %1557 = vmatpush.msrb.mxu0 %v2230_v39 }
 0xa67   : > { %2306 = vpow2.f32 %v1491_v50 }
 0xa68   : > { %1558 = vmatpush.msrb.mxu0 %v2231_v40 }
 0xa6b   : > { %v1419_v44 = vpop.permute.xlu2 %1418 }
 0xa6d   : > { %v2307_v41 = vpop.eup %2306 }
 0xa6e   : > { %v1499_v55 = vsel %vm270_vm0, %v2307_v41, 0.0 }
 0xa6f   : > { %1500 = vadd.xlane.f32.xlu0 %v1499_v55 }
 0xa7a   : > { %v2219_v42 = vpop.permute.xlu1 %2218 }
 0xa7b   : > { %v2220_v38 = vunpack.i.l.bf16 %v2219_v42  ;;  %v2221_v43 = vunpack.i.h.bf16 %v2219_v42 }
 0xa7d   : > { %1395 = vmatpush.msra.mxu3 %v2220_v38 }
 0xa7f   : > { %1396 = vmatpush.msra.mxu3 %v2221_v43 }
 0xa82   : > { %v1417_v59 = vpop.permute.xlu1 %1416 }
 0xa83   : > { %2124 = vmatmul.msk.f32.gmra.mxu2 %vm437_vm15, %v1417_v59  ;;  %1420 = vrot.lane.b32.xlu0 %v2965_v13, %s2423_s11  ;;  %s2370_s11 = sshra.s32 %s2000_s7, 4  ;;  %s2371_s11 = int_to_ptr.hbm [resolvable:$true] %s2370_s11 }
 0xa84   : > { %s2372_s10 = scalar_lea.hbm %s2371_s11, 1  ;;  %p2377_p0 = scmp.lt.s32.totalorder %s2371_s11, %s3279_s5 }
 0xa85   : > { %p2373_p11 = scmp.ne.s32.totalorder %s2371_s11, %s2372_s10  ;;  %p2378_p1 = scmp.lt.s32.totalorder %s2376_s15, %s2372_s10 }
 0xa87   : > { %p2374_p12 = pnand %p2373_p11, %p2494_p5  ;;  %p2379_p2 = por %p2378_p1, %p2377_p0 }
 0xa89   : > { %p2375_p13 = pneg %p2374_p12 }
 0xa8b   : > { %2125 = vmatmul.msk.f32.gmra.mxu2 %vm437_vm15, %v1419_v44  ;;  %p2380_p3 = pnand %p2379_p2, %p2375_p13 }
 0xaad   : > { %1320 = vmax.xlane.f32.xlu0 %v1319_v63  ;;  %v1318_v13 = vpop.xlane.xlu1 %1317 }
 0xaae   : > { %v1326_v60 = vsub.f32 %v1305_v17, %v1318_v13  ;;  %v2133_v13 = vld [vmem:[%s3275_s1 + $0x88] sm:$0xff] }
 0xab0   : > { %v1331_v6 = vmul.f32 1.442695, %v1326_v60 }
 0xad3   : > { %v1339_v49 = vpop.xlane.xlu0 %1338 }
 0xad4   : > { %2308 = vrcp.f32 %v1339_v49 }
 0xada   : > { %v2309_v51 = vpop.eup %2308 }
 0xadb   : > { %v1353_v52 = vmul.f32 %v2309_v51, %v2305_v28 }
 0xadd   : > { %2115 = vmatmul.msk.f32.vlgmr.msra.gmra.mxu3 %vm270_vm0, %v1353_v52 }
 0xae2   : > { %v1501_v53 = vpop.xlane.xlu0 %1500 }
 0xae3   : > { %2310 = vrcp.f32 %v1501_v53 }
 0xae4   : > { %2312 = vpow2.f32 %v1331_v6 }
 0xae9   : > { %v2311_v54 = vpop.eup %2310 }
 0xaea   : > { %v1515_v1 = vmul.f32 %v2311_v54, %v2307_v41  ;;  %v2313_v48 = vpop.eup %2312 }
 0xaeb   : > { %v1340_v3 = vsel %vm270_vm0, %v2313_v48, 0.0 }
 0xaec   : > { %2127 = vmatmul.msk.f32.vlgmr.msrb.gmra.mxu0 %vm270_vm0, %v1515_v1 }
 0xaf5   : > { %v1421_v56 = vpop.permute.xlu0 %1420 }
 0xaf6   : > { %2126 = vmatmul.msk.f32.gmra.mxu2 %vm437_vm15, %v1421_v56  ;;  %v2134_v56 = vld [vmem:[%s3275_s1 + $0x90] sm:$0xff] }
 0xaf7   : > { %1694 = vmatpush.msrb.mxu1 %v2134_v56 }
 0xaf9   : > { %1695 = vmatpush.msrb.mxu1 %v2133_v13  ;;  %v1893_v13 = vld [vmem:[%s3276_s2 + $0x110] sm:$0xff] }
 0xb06   : > { %v1466_v57 = vpop.f32.mrf.mxu2 }
 0xb07   : > { %v1467_v58 = vadd.f32 %v1466_v57, %v1253_v14  ;;  %v2132_v57 = vld [vmem:[%s3275_s1 + $0x80] sm:$0xff] }
 0xb08   : > { %1696 = vmatpush.msrb.mxu1 %v2132_v57 }
 0xb09   : > { %v1478_v61 = vsel %vm270_vm0, %v1467_v58, -inf }
 0xb0a   : > { %1479 = vmax.xlane.f32.xlu1 %v1478_v61 }
 0xb0e   : > { %v1469_v62 = vpop.f32.mrf.mxu2 }
 0xb0f   : > { %v1470_v0 = vadd.f32 %v1469_v62, %v1254_v46 }
 0xb11   : > { %v1481_v2 = vsel %vm270_vm0, %v1470_v0, -inf }
 0xb12   : > { %1482 = vmax.xlane.f32.xlu0 %v1481_v2 }
 0xb1a   : > { %1341 = vadd.xlane.f32.xlu0 %v1340_v3 }
 0xb20   : > { %v1321_v10 = vpop.xlane.xlu0 %1320 }
 0xb21   : > { %v1327_v11 = vsub.f32 %v1308_v47, %v1321_v10 }
 0xb23   : > { %v1333_v16 = vmul.f32 1.442695, %v1327_v11 }
 0xb25   : > { %2314 = vpow2.f32 %v1333_v16 }
 0xb2b   : > { %v2315_v17 = vpop.eup %2314 }
 0xb2c   : > { %v1343_v18 = vsel %vm270_vm0, %v2315_v17, 0.0 }
 0xb60   : > { %v1398_v4 = vpop.f32.mrf.mxu3 }
 0xb61   : > { %v1410_v5 = vadd.f32 %v1398_v4, %v2899_v29 }
 0xb69   : > { %v1560_v19 = vpop.f32.mrf.mxu0 }
 0xb6a   : > { %v3023_v7 = vadd.f32 %v1560_v19, %v1410_v5 }
 0xb6c   : > { %v1576_v8 = vsel %vm270_vm0, %v3023_v7, 0.0 }
 0xb6d   : > { %1577 = vadd.xlane.f32.xlu2 %v1576_v8 }
 0xb75   : > { %1323 = vmax.xlane.f32.xlu2 %v1322_v12 }
 0xb79   : > { %v1472_v29 = vpop.f32.mrf.mxu2 }
 0xb7a   : > { %v1473_v14 = vadd.f32 %v1472_v29, %v1255_v37 }
 0xb7c   : > { %v1484_v15 = vsel %vm270_vm0, %v1473_v14, -inf }
 0xb7d   : > { %1485 = vmax.xlane.f32.xlu1 %v1484_v15  ;;  %v1480_v32 = vpop.xlane.xlu1 %1479 }
 0xb7e   : > { %v1488_v34 = vsub.f32 %v1467_v58, %v1480_v32  ;;  %v2131_v58 = vld [vmem:[%s3275_s1 + $0x78] sm:$0xff] }
 0xb7f   : > { %1697 = vmatpush.msrb.mxu1 %v2131_v58 }
 0xb80   : > { %v1493_v50 = vmul.f32 1.442695, %v1488_v34  ;;  %v1900_v34 = vld [vmem:[%s3276_s2 + $0x148] sm:$0xff] }
 0xb85   : > { %1344 = vadd.xlane.f32.xlu1 %v1343_v18  ;;  %v1483_v21 = vpop.xlane.xlu0 %1482 }
 0xb86   : > { %v1489_v22 = vsub.f32 %v1470_v0, %v1483_v21 }
 0xb88   : > { %v1495_v23 = vmul.f32 1.442695, %v1489_v22 }
 0xb8a   : > { %2316 = vpow2.f32 %v1495_v23 }
 0xb8d   : > { %v1342_v25 = vpop.xlane.xlu0 %1341 }
 0xb8e   : > { %2318 = vrcp.f32 %v1342_v25 }
 0xb8f   : > { %2320 = vpow2.f32 %v1493_v50 }
 0xb90   : > { %v3033_v26 = vpop.eup %2316 }
 0xb91   : > { %v1505_v28 = vsel %vm270_vm0, %v3033_v26, 0.0 }
 0xb92   : > { %1506 = vadd.xlane.f32.xlu1 %v1505_v28 }
 0xb94   : > { %v2319_v30 = vpop.eup %2318 }
 0xb95   : > { %v1354_v31 = vmul.f32 %v2319_v30, %v2313_v48  ;;  %v2321_v59 = vpop.eup %2320  ;;  %v3080_v30 = vld [vmem:[%s3275_s1 + $0x98] ss:$0 sm:$0xff] }
 0xb96   : > { %v1502_v44 = vsel %vm270_vm0, %v2321_v59, 0.0 }
 0xb97   : > { %2116 = vmatmul.msk.f32.gmra.mxu3 %vm270_vm0, %v1354_v31 }
 0xbe0   : > { %v1578_v36 = vpop.xlane.xlu2 %1577 }
 0xbe1   : > { %v1588_v39 = vmul.f32 %v1578_v36, %v2546_v20 }
 0xbe3   : > { %v3040_v40 = vsub.f32 %v3023_v7, %v1588_v39 }
 0xbe5   : > { %v1596_v41 = vmul.f32 %v3040_v40, %v3040_v40 }
 0xbe7   : > { %v1600_v55 = vsel %vm270_vm0, %v1596_v41, 0.0 }
 0xbe8   : > { %1601 = vadd.xlane.f32.xlu2 %v1600_v55  ;;  %v1324_v42 = vpop.xlane.xlu2 %1323  ;;  %v1898_v55 = vld [vmem:[%s3276_s2 + $0x138] sm:$0xff] }
 0xbe9   : > { %v1328_v38 = vsub.f32 %v1311_v45, %v1324_v42 }
 0xbeb   : > { %v1335_v43 = vmul.f32 1.442695, %v1328_v38 }
 0xbed   : > { %2322 = vpow2.f32 %v1335_v43  ;;  %v1897_v43 = vld [vmem:[%s3276_s2 + $0x130] sm:$0xff] }
 0xbf0   : > { %v1486_v46 = vpop.xlane.xlu1 %1485  ;;  %1503 = vadd.xlane.f32.xlu2 %v1502_v44 }
 0xbf1   : > { %v1490_v24 = vsub.f32 %v1473_v14, %v1486_v46  ;;  %v1896_v46 = vld [vmem:[%s3276_s2 + $0x128] sm:$0xff] }
 0xbf3   : > { %v2323_v47 = vpop.eup %2322  ;;  %v1497_v63 = vmul.f32 1.442695, %v1490_v24 }
 0xbf4   : > { %v1346_v49 = vsel %vm270_vm0, %v2323_v47, 0.0 }
 0xbf5   : > { %2324 = vpow2.f32 %v1497_v63  ;;  %1347 = vadd.xlane.f32.xlu0 %v1346_v49 }
 0xbf8   : > { %v1345_v51 = vpop.xlane.xlu1 %1344 }
 0xbf9   : > { %2326 = vrcp.f32 %v1345_v51  ;;  %v1895_v51 = vld [vmem:[%s3276_s2 + $0x120] sm:$0xff] }
 0xbfb   : > { %v2325_v52 = vpop.eup %2324 }
 0xbfc   : > { %v1508_v53 = vsel %vm270_vm0, %v2325_v52, 0.0 }
 0xbfd   : > { %1509 = vadd.xlane.f32.xlu2 %v1508_v53 }
 0xbff   : > { %v2327_v54 = vpop.eup %2326 }
 0xc00   : > { %v1355_v1 = vmul.f32 %v2327_v54, %v2315_v17  ;;  %v1894_v54 = vld [vmem:[%s3276_s2 + $0x118] sm:$0xff] }
 0xc02   : > { %2117 = vmatmul.msk.f32.gmra.mxu3 %vm270_vm0, %v1355_v1 }
 0xc05   : > { %v1507_v2 = vpop.xlane.xlu1 %1506 }
 0xc1a   : > { %v1401_v18 = vpop.f32.mrf.mxu3 }
 0xc1b   : > { %v1411_v21 = vadd.f32 %v1401_v18, %v2904_v35  ;;  %v1901_v35 = vld [vmem:[%s3276_s2 + $0x150] sm:$0xff] }
 0xc5b   : > { %v1602_v60 = vpop.xlane.xlu2 %1601 }
 0xc5c   : > { %v1612_v61 = vmul.f32 %v1602_v60, %v2546_v20  ;;  %v1892_v60 = vld [vmem:[%s3276_s2 + $0x108] sm:$0xff] }
 0xc5e   : > { %v1616_v6 = vadd.f32 1e-05, %v1612_v61 }
 0xc60   : > { %2328 = vrsqrt.f32 %v1616_v6  ;;  %vm1626_vm13 = vweird.f32 %v1616_v6 }
 0xc63   : > { %v1504_v62 = vpop.xlane.xlu2 %1503 }
 0xc64   : > { %2330 = vrcp.f32 %v1504_v62 }
 0xc66   : > { %v2329_v0 = vpop.eup %2328 }
 0xc67   : > { %v1621_v48 = vmul.f32 %v2329_v0, %v1616_v6  ;;  %vm1627_vm15 = vweird.f32 %v2329_v0  ;;  %v1891_v6 = vld [vmem:[%s3276_s2 + $0x100] sm:$0xff] }
 0xc68   : > { %v1348_v3 = vpop.xlane.xlu0 %1347  ;;  %vm1628_vm14 = vmor %vm1626_vm13, %vm1627_vm15  ;;  %vm1960_vm13 = vcmask 1040384  }
 0xc69   : > { %v1622_v4 = vmul.f32 %v2329_v0, %v1621_v48  ;;  %2332 = vrcp.f32 %v1348_v3  ;;  %v1889_v48 = vld [vmem:[%s3276_s2 + $0xf0] sm:$0xff] }
 0xc6a   : > { %v2331_v5 = vpop.eup %2330  ;;  %2334 = vrcp.f32 %v1507_v2  ;;  %v1890_v2 = vld [vmem:[%s3276_s2 + $0xf8] sm:$0xff] }
 0xc6b   : > { %v1623_v19 = vmul.f32 0.5, %v1622_v4  ;;  %v1516_v8 = vmul.f32 %v2331_v5, %v2321_v59  ;;  %v1888_v4 = vld [vmem:[%s3276_s2 + $0xe8] sm:$0xff] }
 0xc6d   : > { %v1624_v37 = vsub.f32 1.5, %v1623_v19  ;;  %2128 = vmatmul.msk.f32.gmra.mxu0 %vm270_vm0, %v1516_v8  ;;  %v1887_v8 = vld [vmem:[%s3276_s2 + $0xe0] sm:$0xff] }
 0xc6f   : > { %v2333_v9 = vpop.eup %2332  ;;  %v1625_v45 = vmul.f32 %v2329_v0, %v1624_v37 }
 0xc70   : > { %v2335_v10 = vpop.eup %2334  ;;  %v1510_v11 = vpop.xlane.xlu2 %1509  ;;  %v1356_v12 = vmul.f32 %v2333_v9, %v2323_v47 }
 0xc71   : > { %v1629_v16 = vsel %vm1628_vm14, %v2329_v0, %v1625_v45  ;;  %2336 = vrcp.f32 %v1510_v11  ;;  %v1517_v14 = vmul.f32 %v2335_v10, %v3033_v26  ;;  %v1902_v26 = vld [vmem:[%s3276_s2 + $0x158] sm:$0xff] }
 0xc72   : > { %v1660_v29 = vmul.f32 %v1629_v16, %v3040_v40  ;;  %2118 = vmatmul.msk.f32.gmra.mxu3 %vm270_vm0, %v1356_v12  ;;  %v1899_v40 = vld [vmem:[%s3276_s2 + $0x140] sm:$0xff] }
 0xc73   : > { %1905 = vmatpush.msrb.mxu3 %v1902_v26 }
 0xc74   : > { %2136 = vmatmul.msk.f32.vlgmr.msrb.gmra.mxu1 %vm270_vm0, %v1660_v29 }
 0xc75   : > { %2129 = vmatmul.msk.f32.gmra.mxu0 %vm270_vm0, %v1517_v14  ;;  %1906 = vmatpush.msrb.mxu3 %v1901_v35 }
 0xc77   : > { %v2337_v15 = vpop.eup %2336  ;;  %1907 = vmatpush.msrb.mxu3 %v1900_v34 }
 0xc78   : > { %v1518_v17 = vmul.f32 %v2337_v15, %v2325_v52 }
 0xc79   : > { %1908 = vmatpush.msrb.mxu3 %v1899_v40  ;;  %v1935_v40 = vld [vmem:[%s3278_s4 + $0x18] sm:$0xff] }
 0xc7a   : > { %1952 = vmatpush.msrb.mxu2 %v1935_v40 }
 0xc7b   : > { %1909 = vmatpush.msrb.mxu3 %v1898_v55 }
 0xc7d   : > { %2130 = vmatmul.msk.f32.gmra.mxu0 %vm270_vm0, %v1518_v17  ;;  %1910 = vmatpush.msrb.mxu3 %v1897_v43 }
 0xc7f   : > { %1911 = vmatpush.msrb.mxu3 %v1896_v46 }
 0xc81   : > { %1912 = vmatpush.msrb.mxu3 %v1895_v51 }
 0xc83   : > { %1913 = vmatpush.msrb.mxu3 %v1894_v54 }
 0xc85   : > { %v1404_v28 = vpop.f32.mrf.mxu3  ;;  %1914 = vmatpush.msrb.mxu3 %v1893_v13 }
 0xc86   : > { %v1412_v31 = vadd.f32 %v1404_v28, %v2909_v33 }
 0xc87   : > { %1915 = vmatpush.msrb.mxu3 %v1892_v60 }
 0xc89   : > { %1916 = vmatpush.msrb.mxu3 %v1891_v6 }
 0xc8b   : > { %1917 = vmatpush.msrb.mxu3 %v1890_v2 }
 0xc8d   : > { %1918 = vmatpush.msrb.mxu3 %v1889_v48 }
 0xc8f   : > { %1919 = vmatpush.msrb.mxu3 %v1888_v4 }
 0xc91   : > { %1920 = vmatpush.msrb.mxu3 %v1887_v8 }
 0xcea   : > { %v1563_v22 = vpop.f32.mrf.mxu0 }
 0xceb   : > { %v3070_v23 = vadd.f32 %v1563_v22, %v1411_v21 }
 0xced   : > { %v1579_v25 = vsel %vm270_vm0, %v3070_v23, 0.0 }
 0xcee   : > { %1580 = vadd.xlane.f32.xlu0 %v1579_v25 }
 0xcf1   : > { %v1699_v32 = vpop.f32.mrf.mxu1 }
 0xcf2   : > { %v3090_v36 = vadd.f32 %v3080_v30, %v1699_v32  ;;  %v1566_v39 = vpop.f32.mrf.mxu0 }
 0xcf3   : > { %v3092_v50 = vadd.f32 %v1566_v39, %v1412_v31 }
 0xcf4   : > { %v3098_v41 = vmul.f32 0.70710677, %v3090_v36  ;;  %v1711_v32 = vmul.f32 0.5, %v3090_v36 }
 0xcf5   : > { %v1582_v33 = vsel %vm270_vm0, %v3092_v50, 0.0  ;;  %v1407_v38 = vpop.f32.mrf.mxu3 }
 0xcf6   : > { %v1719_v42 = vmul.f32 %v3098_v41, %v3098_v41  ;;  %1583 = vadd.xlane.f32.xlu1 %v1582_v33  ;;  %v1413_v44 = vadd.f32 %v1407_v38, %v2914_v27  ;;  %v1934_v33 = vld [vmem:[%s3278_s4 + $0x10] sm:$0xff] }
 0xcf7   : > { %1953 = vmatpush.msrb.mxu2 %v1934_v33 }
 0xcf8   : > { %v1720_v59 = vmin.f32 %v1719_v42, 16.0 }
 0xcfa   : > { %v1721_v24 = vmul.f32 2.1237322e-06, %v1720_v59  ;;  %v1732_v47 = vmul.f32 3.8918573e-05, %v1720_v59  ;;  %v1569_v63 = vpop.f32.mrf.mxu0 }
 0xcfb   : > { %v3114_v49 = vadd.f32 %v1569_v63, %v1413_v44 }
 0xcfc   : > { %v1722_v52 = vadd.f32 0.00028619796, %v1721_v24  ;;  %v1733_v53 = vadd.f32 0.001143296, %v1732_v47 }
 0xcfd   : > { %v1585_v27 = vsel %vm270_vm0, %v3114_v49, 0.0 }
 0xcfe   : > { %v1723_v1 = vmul.f32 %v1722_v52, %v1720_v59  ;;  %v1734_v56 = vmul.f32 %v1733_v53, %v1720_v59  ;;  %1586 = vadd.xlane.f32.xlu2 %v1585_v27  ;;  %v1932_v27 = vld [vmem:[%s3278_s4] sm:$0xff] }
 0xd00   : > { %v1735_v57 = vadd.f32 0.014752088, %v1734_v56  ;;  %v1724_v58 = vadd.f32 0.0036580483, %v1723_v1 }
 0xd02   : > { %v1736_v61 = vmul.f32 %v1735_v57, %v1720_v59  ;;  %v1725_v0 = vmul.f32 %v1724_v58, %v1720_v59 }
 0xd04   : > { %v1737_v62 = vadd.f32 0.112945676, %v1736_v61  ;;  %v1726_v19 = vadd.f32 0.05243302, %v1725_v0 }
 0xd06   : > { %v1738_v3 = vmul.f32 %v1737_v62, %v1720_v59  ;;  %v1727_v45 = vmul.f32 %v1726_v19, %v1720_v59 }
 0xd08   : > { %v1739_v5 = vadd.f32 0.4994258, %v1738_v3  ;;  %v1728_v10 = vadd.f32 0.18741608, %v1727_v45 }
 0xd0a   : > { %v1740_v37 = vmul.f32 %v1739_v5, %v1720_v59  ;;  %v1729_v12 = vmul.f32 %v1728_v10, %v1720_v59 }
 0xd0c   : > { %v1741_v9 = vadd.f32 1.0, %v1740_v37  ;;  %v1730_v15 = vadd.f32 1.1283791, %v1729_v12 }
 0xd0e   : > { %2338 = vrcp.f32 %v1741_v9  ;;  %v1753_v14 = vand.u32 2147483648, %v1741_v9  ;;  %v1751_v18 = vand.u32 2147483647, %v1741_v9  ;;  %vm1747_vm2 = vweird.f32 %v1741_v9 }
 0xd0f   : > { %v1731_v25 = vmul.f32 %v1730_v15, %v3098_v41  ;;  %v1933_v41 = vld [vmem:[%s3278_s4 + $0x8] sm:$0xff] }
 0xd10   : > { %v1754_v22 = vor.u32 1.1754944e-38, %v1753_v14  ;;  %vm1752_vm4 = vcmp.eq.f32.partialorder %v1751_v18, 8.507059e+37  ;;  %1954 = vmatpush.msrb.mxu2 %v1933_v41 }
 0xd12   : > { %1955 = vmatpush.msrb.mxu2 %v1932_v27 }
 0xd14   : > { %v2339_v11 = vpop.eup %2338 }
 0xd15   : > { %v1743_v16 = vmul.f32 %v2339_v11, %v1741_v9  ;;  %vm1748_vm1 = vweird.f32 %v2339_v11 }
 0xd16   : > { %vm1749_vm3 = vmor %vm1747_vm2, %vm1748_vm1 }
 0xd17   : > { %v1744_v29 = vsub.f32 1.0, %v1743_v16 }
 0xd19   : > { %v1745_v17 = vmul.f32 %v2339_v11, %v1744_v29 }
 0xd1b   : > { %v1746_v21 = vadd.f32 %v2339_v11, %v1745_v17 }
 0xd1d   : > { %v1750_v26 = vsel %vm1749_vm3, %v2339_v11, %v1746_v21 }
 0xd1e   : > { %v1755_v28 = vsel %vm1752_vm4, %v1754_v22, %v1750_v26  ;;  %v1936_v26 = vld [vmem:[%s3278_s4 + $0x20] sm:$0x1] }
 0xd1f   : > { %v1756_v35 = vmul.f32 %v1755_v28, %v1731_v25 }
 0xd21   : > { %v2140_v31 = vclamps-f32 %v1756_v35, 1.0 }
 0xd23   : > { %v1879_v34 = vadd.f32 1.0, %v2140_v31 }
 0xd25   : > { %v1883_v39 = vmul.f32 %v1879_v34, %v1711_v32 }
 0xd27   : > { %1921 = vmatmul.f32.vlgmr.msrb.gmra.mxu3 %v1883_v39 }
 0xd61   : > { %v1581_v55 = vpop.xlane.xlu0 %1580 }
 0xd62   : > { %v1589_v36 = vmul.f32 %v1581_v55, %v2546_v20 }
 0xd64   : > { %v1593_v42 = vsub.f32 %v3070_v23, %v1589_v36 }
 0xd66   : > { %v1597_v38 = vmul.f32 %v1593_v42, %v1593_v42 }
 0xd68   : > { %v1603_v43 = vsel %vm270_vm0, %v1597_v38, 0.0 }
 0xd69   : > { %1604 = vadd.xlane.f32.xlu0 %v1603_v43  ;;  %v1584_v59 = vpop.xlane.xlu1 %1583 }
 0xd6a   : > { %v1590_v44 = vmul.f32 %v1584_v59, %v2546_v20 }
 0xd6c   : > { %v1594_v46 = vsub.f32 %v3092_v50, %v1590_v44  ;;  %v2237_v50 = vld [vmem:[%s3276_s2 + $0x168] ss:$0 sm:$0xff] }
 0xd6e   : > { %v1598_v24 = vmul.f32 %v1594_v46, %v1594_v46 }
 0xd70   : > { %v1606_v47 = vsel %vm270_vm0, %v1598_v24, 0.0 }
 0xd71   : > { %1607 = vadd.xlane.f32.xlu1 %v1606_v47  ;;  %v1587_v63 = vpop.xlane.xlu2 %1586 }
 0xd72   : > { %v1591_v51 = vmul.f32 %v1587_v63, %v2546_v20 }
 0xd74   : > { %v1595_v52 = vsub.f32 %v3114_v49, %v1591_v51 }
 0xd76   : > { %v1599_v53 = vmul.f32 %v1595_v52, %v1595_v52 }
 0xd78   : > { %v1609_v23 = vsel %vm270_vm0, %v1599_v53, 0.0 }
 0xd79   : > { %1610 = vadd.xlane.f32.xlu2 %v1609_v23 }
 0xdaa   : > { %v1922_v54 = vpop.f32.mrf.mxu3 }
 0xdab   : > { %v1923_v1 = vadd.f32 %v2237_v50, %v1922_v54 }
 0xdad   : > { %v1931_v56 = vadd.f32 %v1923_v1, %v3023_v7 }
 0xdaf   : > { %2144 = vmatmul.msk.f32.vlgmr.msrb.gmra.mxu2 %vm270_vm0, %v1931_v56 }
 0xddc   : > { %v1605_v49 = vpop.xlane.xlu0 %1604 }
 0xddd   : > { %v1613_v13 = vmul.f32 %v1605_v49, %v2546_v20 }
 0xddf   : > { %v1617_v57 = vadd.f32 1e-05, %v1613_v13 }
 0xde1   : > { %2340 = vrsqrt.f32 %v1617_v57  ;;  %vm1636_vm6 = vweird.f32 %v1617_v57 }
 0xde4   : > { %v1608_v58 = vpop.xlane.xlu1 %1607 }
 0xde5   : > { %v1614_v60 = vmul.f32 %v1608_v58, %v2546_v20 }
 0xde7   : > { %v2341_v61 = vpop.eup %2340  ;;  %v1618_v6 = vadd.f32 1e-05, %v1614_v60 }
 0xde8   : > { %v1631_v62 = vmul.f32 %v2341_v61, %v1617_v57  ;;  %vm1637_vm5 = vweird.f32 %v2341_v61 }
 0xde9   : > { %2342 = vrsqrt.f32 %v1618_v6  ;;  %vm1638_vm7 = vmor %vm1636_vm6, %vm1637_vm5  ;;  %vm1646_vm9 = vweird.f32 %v1618_v6 }
 0xdea   : > { %v1632_v0 = vmul.f32 %v2341_v61, %v1631_v62 }
 0xdec   : > { %v1633_v2 = vmul.f32 0.5, %v1632_v0  ;;  %v1611_v48 = vpop.xlane.xlu2 %1610 }
 0xded   : > { %v1615_v3 = vmul.f32 %v1611_v48, %v2546_v20 }
 0xdee   : > { %v1634_v7 = vsub.f32 1.5, %v1633_v2 }
 0xdef   : > { %v2343_v4 = vpop.eup %2342  ;;  %v1619_v5 = vadd.f32 1e-05, %v1615_v3 }
 0xdf0   : > { %v1641_v19 = vmul.f32 %v2343_v4, %v1618_v6  ;;  %v1635_v8 = vmul.f32 %v2341_v61, %v1634_v7  ;;  %vm1647_vm8 = vweird.f32 %v2343_v4 }
 0xdf1   : > { %2344 = vrsqrt.f32 %v1619_v5  ;;  %vm1648_vm10 = vmor %vm1646_vm9, %vm1647_vm8  ;;  %vm1656_vm12 = vweird.f32 %v1619_v5 }
 0xdf2   : > { %v1642_v37 = vmul.f32 %v2343_v4, %v1641_v19  ;;  %v1639_v9 = vsel %vm1638_vm7, %v2341_v61, %v1635_v8 }
 0xdf3   : > { %v1661_v45 = vmul.f32 %v1639_v9, %v1593_v42 }
 0xdf4   : > { %v1643_v10 = vmul.f32 0.5, %v1642_v37 }
 0xdf5   : > { %2137 = vmatmul.msk.f32.gmra.mxu1 %vm270_vm0, %v1661_v45 }
 0xdf6   : > { %v1644_v11 = vsub.f32 1.5, %v1643_v10 }
 0xdf7   : > { %v2345_v12 = vpop.eup %2344 }
 0xdf8   : > { %v1651_v20 = vmul.f32 %v2345_v12, %v1619_v5  ;;  %v1645_v16 = vmul.f32 %v2343_v4, %v1644_v11  ;;  %vm1657_vm11 = vweird.f32 %v2345_v12 }
 0xdf9   : > { %vm1658_vm15 = vmor %vm1656_vm12, %vm1657_vm11 }
 0xdfa   : > { %v1652_v29 = vmul.f32 %v2345_v12, %v1651_v20  ;;  %v1649_v14 = vsel %vm1648_vm10, %v2343_v4, %v1645_v16 }
 0xdfb   : > { %v1662_v15 = vmul.f32 %v1649_v14, %v1594_v46 }
 0xdfc   : > { %v1653_v17 = vmul.f32 0.5, %v1652_v29 }
 0xdfd   : > { %2138 = vmatmul.msk.f32.gmra.mxu1 %vm270_vm0, %v1662_v15 }
 0xdfe   : > { %v1654_v18 = vsub.f32 1.5, %v1653_v17 }
 0xe00   : > { %v1655_v21 = vmul.f32 %v2345_v12, %v1654_v18 }
 0xe02   : > { %v1659_v22 = vsel %vm1658_vm15, %v2345_v12, %v1655_v21 }
 0xe03   : > { %v1663_v25 = vmul.f32 %v1659_v22, %v1595_v52 }
 0xe05   : > { %2139 = vmatmul.msk.f32.gmra.mxu1 %vm270_vm0, %v1663_v25 }
 0xe32   : > { %v1957_v28 = vpop.f32.mrf.mxu2 }
 0xe33   : > { %v3182_v35 = vadd.f32 %v1957_v28, %v1936_v26 }
 0xe35   : > { %v1961_v31 = vsel %vm1960_vm13, %v3182_v35, -inf }
 0xe36   : > { %1962 = vmax.xlane.f32.xlu0 %v1961_v31 }
 0xe72   : > { %v1702_v32 = vpop.f32.mrf.mxu1 }
 0xe73   : > { %v3187_v34 = vadd.f32 %v3080_v30, %v1702_v32 }
 0xe75   : > { %v3190_v39 = vmul.f32 0.70710677, %v3187_v34 }
 0xe77   : > { %v1759_v40 = vmul.f32 %v3190_v39, %v3190_v39 }
 0xe79   : > { %v1760_v33 = vmin.f32 %v1759_v40, 16.0 }
 0xe7a   : > { %v1705_v41 = vpop.f32.mrf.mxu1 }
 0xe7b   : > { %v1761_v55 = vmul.f32 2.1237322e-06, %v1760_v33  ;;  %v3195_v36 = vadd.f32 %v3080_v30, %v1705_v41  ;;  %v1772_v42 = vmul.f32 3.8918573e-05, %v1760_v33 }
 0xe7d   : > { %v1762_v38 = vadd.f32 0.00028619796, %v1761_v55  ;;  %v3198_v43 = vmul.f32 0.70710677, %v3195_v36  ;;  %v1773_v59 = vadd.f32 0.001143296, %v1772_v42 }
 0xe7f   : > { %v1763_v44 = vmul.f32 %v1762_v38, %v1760_v33  ;;  %v1799_v46 = vmul.f32 %v3198_v43, %v3198_v43  ;;  %v1774_v24 = vmul.f32 %v1773_v59, %v1760_v33 }
 0xe81   : > { %v3202_v47 = vmin.f32 %v1799_v46, 16.0  ;;  %v1775_v51 = vadd.f32 0.014752088, %v1774_v24  ;;  %v1764_v52 = vadd.f32 0.0036580483, %v1763_v44 }
 0xe82   : > { %v1708_v63 = vpop.f32.mrf.mxu1 }
 0xe83   : > { %v1801_v53 = vmul.f32 2.1237322e-06, %v3202_v47  ;;  %v3206_v23 = vadd.f32 %v3080_v30, %v1708_v63  ;;  %v1812_v27 = vmul.f32 3.8918573e-05, %v3202_v47  ;;  %v1776_v50 = vmul.f32 %v1775_v51, %v1760_v33 }
 0xe84   : > { %v1765_v13 = vmul.f32 %v1764_v52, %v1760_v33 }
 0xe85   : > { %v1802_v54 = vadd.f32 0.00028619796, %v1801_v53  ;;  %v3210_v1 = vmul.f32 0.70710677, %v3206_v23  ;;  %v1777_v56 = vadd.f32 0.112945676, %v1776_v50 }
 0xe86   : > { %v1813_v49 = vadd.f32 0.001143296, %v1812_v27  ;;  %v1766_v0 = vadd.f32 0.05243302, %v1765_v13 }
 0xe87   : > { %v1803_v57 = vmul.f32 %v1802_v54, %v3202_v47  ;;  %v1839_v58 = vmul.f32 %v3210_v1, %v3210_v1  ;;  %v1778_v60 = vmul.f32 %v1777_v56, %v1760_v33 }
 0xe88   : > { %v1814_v61 = vmul.f32 %v1813_v49, %v3202_v47  ;;  %v1767_v37 = vmul.f32 %v1766_v0, %v1760_v33 }
 0xe89   : > { %v3216_v30 = vmin.f32 %v1839_v58, 16.0  ;;  %v1779_v6 = vadd.f32 0.4994258, %v1778_v60  ;;  %v1804_v2 = vadd.f32 0.0036580483, %v1803_v57 }
 0xe8a   : > { %v1815_v62 = vadd.f32 0.014752088, %v1814_v61  ;;  %v1768_v20 = vadd.f32 0.18741608, %v1767_v37 }
 0xe8b   : > { %v1841_v48 = vmul.f32 2.1237322e-06, %v3216_v30  ;;  %v1780_v3 = vmul.f32 %v1779_v6, %v1760_v33  ;;  %v1852_v4 = vmul.f32 3.8918573e-05, %v3216_v30  ;;  %v1805_v45 = vmul.f32 %v1804_v2, %v3202_v47 }
 0xe8c   : > { %v1816_v7 = vmul.f32 %v1815_v62, %v3202_v47  ;;  %v1769_v22 = vmul.f32 %v1768_v20, %v1760_v33 }
 0xe8d   : > { %v1842_v5 = vadd.f32 0.00028619796, %v1841_v48  ;;  %v1781_v19 = vadd.f32 1.0, %v1780_v3  ;;  %v1853_v9 = vadd.f32 0.001143296, %v1852_v4 }
 0xe8e   : > { %v1817_v8 = vadd.f32 0.112945676, %v1816_v7  ;;  %v1806_v14 = vadd.f32 0.05243302, %v1805_v45  ;;  %v1770_v42 = vadd.f32 1.1283791, %v1769_v22 }
 0xe8f   : > { %2346 = vrcp.f32 %v1781_v19  ;;  %v1843_v10 = vmul.f32 %v1842_v5, %v3216_v30  ;;  %v1854_v12 = vmul.f32 %v1853_v9, %v3216_v30  ;;  %v1793_v41 = vand.u32 2147483648, %v1781_v19 }
 0xe90   : > { %v1818_v11 = vmul.f32 %v1817_v8, %v3202_v47  ;;  %v1807_v28 = vmul.f32 %v1806_v14, %v3202_v47  ;;  %v1791_v59 = vand.u32 2147483647, %v1781_v19  ;;  %vm1787_vm14 = vweird.f32 %v1781_v19 }
 0xe91   : > { %v1855_v29 = vadd.f32 0.014752088, %v1854_v12  ;;  %v1844_v15 = vadd.f32 0.0036580483, %v1843_v10  ;;  %v1794_v63 = vor.u32 1.1754944e-38, %v1793_v41  ;;  %v1771_v53 = vmul.f32 %v1770_v42, %v3190_v39 }
 0xe92   : > { %v1819_v16 = vadd.f32 0.4994258, %v1818_v11  ;;  %v1808_v44 = vadd.f32 0.18741608, %v1807_v28  ;;  %vm1792_vm2 = vcmp.eq.f32.partialorder %v1791_v59, 8.507059e+37  ;;  %v1712_v39 = vmul.f32 0.5, %v3187_v34 }
 0xe93   : > { %v1856_v18 = vmul.f32 %v1855_v29, %v3216_v30  ;;  %v1845_v32 = vmul.f32 %v1844_v15, %v3216_v30 }
 0xe94   : > { %v1820_v17 = vmul.f32 %v1819_v16, %v3202_v47  ;;  %v1809_v50 = vmul.f32 %v1808_v44, %v3202_v47  ;;  %v1713_v16 = vmul.f32 0.5, %v3195_v36 }
 0xe95   : > { %v2347_v21 = vpop.eup %2346  ;;  %v1857_v31 = vadd.f32 0.112945676, %v1856_v18  ;;  %v1846_v24 = vadd.f32 0.05243302, %v1845_v32  ;;  %v1714_v32 = vmul.f32 0.5, %v3206_v23 }
 0xe96   : > { %v1783_v25 = vmul.f32 %v2347_v21, %v1781_v19  ;;  %v1821_v26 = vadd.f32 1.0, %v1820_v17  ;;  %vm1788_vm0 = vweird.f32 %v2347_v21  ;;  %v1810_v6 = vadd.f32 1.1283791, %v1809_v50 }
 0xe97   : > { %v1858_v55 = vmul.f32 %v1857_v31, %v3216_v30  ;;  %vm1789_vm1 = vmor %vm1787_vm14, %vm1788_vm0  ;;  %v1847_v49 = vmul.f32 %v1846_v24, %v3216_v30 }
 0xe98   : > { %v1784_v40 = vsub.f32 1.0, %v1783_v25  ;;  %2348 = vrcp.f32 %v1821_v26  ;;  %v1833_v61 = vand.u32 2147483648, %v1821_v26  ;;  %v1831_v0 = vand.u32 2147483647, %v1821_v26 }
 0xe99   : > { %v1859_v46 = vadd.f32 0.4994258, %v1858_v55  ;;  %v1848_v2 = vadd.f32 0.18741608, %v1847_v49  ;;  %vm1827_vm4 = vweird.f32 %v1821_v26  ;;  %v1811_v4 = vmul.f32 %v1810_v6, %v3198_v43 }
 0xe9a   : > { %v1785_v38 = vmul.f32 %v2347_v21, %v1784_v40  ;;  %v1834_v7 = vor.u32 1.1754944e-38, %v1833_v61  ;;  %vm1832_vm6 = vcmp.eq.f32.partialorder %v1831_v0, 8.507059e+37 }
 0xe9b   : > { %v1860_v51 = vmul.f32 %v1859_v46, %v3216_v30  ;;  %v1849_v8 = vmul.f32 %v1848_v2, %v3216_v30 }
 0xe9c   : > { %v1786_v33 = vadd.f32 %v2347_v21, %v1785_v38 }
 0xe9d   : > { %v1861_v57 = vadd.f32 1.0, %v1860_v51  ;;  %v1850_v29 = vadd.f32 1.1283791, %v1849_v8 }
 0xe9e   : > { %v2349_v52 = vpop.eup %2348  ;;  %v1790_v27 = vsel %vm1789_vm1, %v2347_v21, %v1786_v33 }
 0xe9f   : > { %v1795_v54 = vsel %vm1792_vm2, %v1794_v63, %v1790_v27  ;;  %v1823_v56 = vmul.f32 %v2349_v52, %v1821_v26  ;;  %2350 = vrcp.f32 %v1861_v57  ;;  %vm1828_vm3 = vweird.f32 %v2349_v52 }
 0xea0   : > { %v1796_v13 = vmul.f32 %v1795_v54, %v1771_v53  ;;  %vm1829_vm5 = vmor %vm1827_vm4, %vm1828_vm3  ;;  %v1871_v14 = vand.u32 2147483647, %v1861_v57  ;;  %v1873_v43 = vand.u32 2147483648, %v1861_v57  ;;  %vm1867_vm8 = vweird.f32 %v1861_v57 }
 0xea1   : > { %v1824_v58 = vsub.f32 1.0, %v1823_v56 }
 0xea2   : > { %v2141_v60 = vclamps-f32 %v1796_v13, 1.0  ;;  %v1874_v21 = vor.u32 1.1754944e-38, %v1873_v43  ;;  %vm1872_vm10 = vcmp.eq.f32.partialorder %v1871_v14, 8.507059e+37 }
 0xea3   : > { %v1825_v62 = vmul.f32 %v2349_v52, %v1824_v58 }
 0xea4   : > { %v1880_v48 = vadd.f32 1.0, %v2141_v60 }
 0xea5   : > { %v1826_v3 = vadd.f32 %v2349_v52, %v1825_v62  ;;  %v2351_v19 = vpop.eup %2350 }
 0xea6   : > { %v1884_v47 = vmul.f32 %v1880_v48, %v1712_v39  ;;  %v1863_v10 = vmul.f32 %v2351_v19, %v1861_v57  ;;  %vm1868_vm7 = vweird.f32 %v2351_v19 }
 0xea7   : > { %v1830_v5 = vsel %vm1829_vm5, %v2349_v52, %v1826_v3  ;;  %vm1869_vm9 = vmor %vm1867_vm8, %vm1868_vm7 }
 0xea8   : > { %1924 = vmatmul.f32.gmra.mxu3 %v1884_v47  ;;  %v1835_v9 = vsel %vm1832_vm6, %v1834_v7, %v1830_v5  ;;  %v1864_v20 = vsub.f32 1.0, %v1863_v10 }
 0xea9   : > { %v1963_v37 = vpop.xlane.xlu0 %1962  ;;  %v1836_v34 = vmul.f32 %v1835_v9, %v1811_v4 }
 0xeaa   : > { %v1964_v45 = vsub.f32 %v3182_v35, %v1963_v37  ;;  %v1865_v17 = vmul.f32 %v2351_v19, %v1864_v20  ;;  %v1851_v35 = vmul.f32 %v1850_v29, %v3210_v1 }
 0xeab   : > { %v2142_v12 = vclamps-f32 %v1836_v34, 1.0 }
 0xeac   : > { %v1965_v11 = vmul.f32 1.442695, %v1964_v45  ;;  %v1866_v18 = vadd.f32 %v2351_v19, %v1865_v17 }
 0xead   : > { %v1881_v15 = vadd.f32 1.0, %v2142_v12 }
 0xeae   : > { %2352 = vpow2.f32 %v1965_v11  ;;  %v1870_v22 = vsel %vm1869_vm9, %v2351_v19, %v1866_v18 }
 0xeaf   : > { %v1885_v30 = vmul.f32 %v1881_v15, %v1713_v16  ;;  %v1875_v25 = vsel %vm1872_vm10, %v1874_v21, %v1870_v22 }
 0xeb0   : > { %v1876_v26 = vmul.f32 %v1875_v25, %v1851_v35 }
 0xeb1   : > { %1926 = vmatmul.f32.gmra.mxu3 %v1885_v30 }
 0xeb2   : > { %v2143_v31 = vclamps-f32 %v1876_v26, 1.0 }
 0xeb4   : > { %v2353_v36 = vpop.eup %2352  ;;  %v1882_v40 = vadd.f32 1.0, %v2143_v31 }
 0xeb5   : > { %v1967_v28 = vsel %vm1960_vm13, %v2353_v36, 0.0 }
 0xeb6   : > { %1968 = vadd.xlane.f32.xlu1 %v1967_v28  ;;  %v1886_v41 = vmul.f32 %v1882_v40, %v1714_v32 }
 0xeb9   : > { %1928 = vmatmul.f32.gmra.mxu3 %v1886_v41 }
 0xf29   : > { %v1969_v55 = vpop.xlane.xlu1 %1968 }
 0xf2a   : > { %2354 = vrcp.f32 %v1969_v55  ;;  %v1981_v44 = vand.u32 2147483648, %v1969_v55  ;;  %v1979_v24 = vand.u32 2147483647, %v1969_v55  ;;  %vm1975_vm12 = vweird.f32 %v1969_v55 }
 0xf2b   : > { %v1925_v1 = vpop.f32.mrf.mxu3 }
 0xf2c   : > { %v1982_v63 = vor.u32 1.1754944e-38, %v1981_v44  ;;  %vm1980_vm13 = vcmp.eq.f32.partialorder %v1979_v24, 8.507059e+37 }
 0xf30   : > { %v2355_v42 = vpop.eup %2354 }
 0xf31   : > { %v1971_v38 = vmul.f32 %v2355_v42, %v1969_v55  ;;  %vm1976_vm11 = vweird.f32 %v2355_v42 }
 0xf32   : > { %vm1977_vm15 = vmor %vm1975_vm12, %vm1976_vm11 }
 0xf33   : > { %v1972_v59 = vsub.f32 1.0, %v1971_v38 }
 0xf34   : > { %v1927_v33 = vpop.f32.mrf.mxu3 }
 0xf35   : > { %v1973_v46 = vmul.f32 %v2355_v42, %v1972_v59 }
 0xf37   : > { %v1974_v23 = vadd.f32 %v2355_v42, %v1973_v46 }
 0xf39   : > { %v1978_v51 = vsel %vm1977_vm15, %v2355_v42, %v1974_v23 }
 0xf3a   : > { %v1983_v52 = vsel %vm1980_vm13, %v1982_v63, %v1978_v51 }
 0xf3b   : > { %v1984_v53 = vmul.f32 %v2353_v36, %v1983_v52 }
 0xf3d   : > { %1985 = vst [vmem:[%s217_s6] sm:$0x1] %v1984_v53 }
 0xf3e   : > { %2383 = shalt.err (!%p2380_p3)
}
 0xf3f   : > { %2147 = dma.vmem_to_hbm [thread:$0]  (%p2494_p5), %s1998_s9, 16, %s2000_s7, %s1987_s8   ;;  %v1929_v27 = vpop.f32.mrf.mxu3 }
 0xf40 PF: > { %p2153_p4 = scmp.ge.s32.totalorder %s2418_s21, 2  ;;  %s2011_s23 = sand.u32 1, %s2406_s18  }
 0xf41   : > { %s2012_s25 = scalar_lea.sflag [#allocation4], %s2011_s23 }
 0xf42   : > { %p2150_p7 = pnand %p2153_p4, %p2498_p6 }
 0xf44   : > { %p2151_p8 = pneg %p2150_p7 }
 0xf46   : > { %2401 = dma.done.wait (%p2151_p8), %s2012_s25, 16  }
 0xf47   : > { %2403 = vsyncadd (%p2151_p8), %s2012_s25, 4294967280  ;;  %p15_p9 = scmp.ge.s32.totalorder %s2481_s24, 4   ;;  %s3282_s18 = smov %s2410_s19 }
 0xf48   : > { %s3283_s19 = smov %s2414_s20  ;;  %s3284_s20 = smov %s2492_s27 }
 0xf49   : > { %s3285_s21 = smov %s2481_s24  ;;  %17 = sbr.rel (!%p15_p9) target bundleno = 3 (0x3), region = 76 }
 0xf4e   :  { %2017 = vsyncpa [#allocation4], 1 }
 0xf4f   :  { %2019 = vsyncpa [#allocation4 + $0x1], 1 }

</bundles_post_ra>
